<compile_context>
chip_gen: v5e
topology: v5e:2x2
jax: 0.10.0
libtpu: 0.0.40
codegen_flags: <defaults>
</compile_context>

<pallas_src>
import functools
import math

import jax
import jax.numpy as jnp
from jax import lax
from jax.experimental import pallas as pl
from jax.experimental.pallas import tpu as pltpu

LN_EPS = 1e-5  # nn.LayerNorm default


# ----------------------------------------------------------------------------
# Kernel
# ----------------------------------------------------------------------------
def _pm_kernel(x_ref, w_ref, b_ref, o_ref, *, p, pC, WC, wp, out_dim,
               patch_dim, compute_dtype):
    """One (tile, p*W*C) band -> (tile, wp*out_dim) merged + LN + projected.

    x_ref: (tile, p*W*C)     one row = all wp patches of one (batch, patch-row)
    w_ref: (p, p*C, out_dim) LN-affine-folded shared projection weight
    b_ref: (1, out_dim)      folded bias (beta @ W.T), f32
    o_ref: (tile, wp*out_dim)
    """
    x = x_ref[...].astype(jnp.float32)   # LN statistics / centering in f32
    w = w_ref[...]                       # compute_dtype (bf16 by default)
    bias = b_ref[...]                    # (1, out_dim) f32
    inv_pd = 1.0 / patch_dim

    for j in range(wp):                  # static unroll over patch columns
        # Lane slices of patch j: p contiguous chunks of width p*C, stride W*C.
        slices = [x[:, k * WC + j * pC: k * WC + (j + 1) * pC] for k in range(p)]
        s = sum(sl.sum(axis=-1, keepdims=True) for sl in slices)
        mean = s * inv_pd
        centered = [sl - mean for sl in slices]
        var = sum((c * c).sum(axis=-1, keepdims=True) for c in centered) * inv_pd
        # Padded (all-zero) rows hit rsqrt(LN_EPS): finite, output==bias, and
        # those rows are sliced off by the wrapper.  Do not "fix" into a NaN.
        rstd = lax.rsqrt(var + LN_EPS)

        acc = bias
        for k in range(p):
            xn = (centered[k] * rstd).astype(compute_dtype)
            acc = acc + jnp.dot(xn, w[k], preferred_element_type=jnp.float32)
        o_ref[:, j * out_dim:(j + 1) * out_dim] = acc.astype(o_ref.dtype)


# ----------------------------------------------------------------------------
# Host-side helpers
# ----------------------------------------------------------------------------
def _tpu_hw_info():
    """(vmem_capacity_bytes, num_tensorcores) with safe fallbacks."""
    vmem_cap = 64 << 20          # conservative default (v7x per-core VMEM)
    num_cores = 1
    try:
        info = pltpu.get_tpu_info()
        vmem_cap = int(getattr(info, "vmem_capacity_bytes", vmem_cap))
    except Exception:
        pass
    try:
        kind = jax.devices()[0].device_kind.lower()
        if "v7" in kind or "7x" in kind:
            num_cores = 2        # v7x: 2 TensorCores per chip
    except Exception:
        pass
    return vmem_cap, num_cores


def _pick_row_tile(n_rows, row_bytes, budget, num_cores, max_tile=1024):
    """Row tile: multiple of 8 sublanes that fits the VMEM budget.

    Single-TC chips (v5e/v6e): largest tile that fits, even if that means a
    1-step grid (grid is a serial loop there, extra steps are pure overhead).
    2-TC chips (v7x): keep >= 2 grid steps, preferring an even step count so
    the parallel axis splits cleanly across both cores.
    Prefers exact divisors of n_rows so no padding is needed.
    """
    rows8 = -(-n_rows // 8) * 8
    fit = (budget // max(1, row_bytes)) // 8 * 8
    cap = max(8, min(max_tile, fit, rows8))
    if num_cores >= 2 and rows8 >= 16:
        cap = max(8, min(cap, (rows8 // 16) * 8))
    best_odd = None
    for t in range(cap, 7, -8):
        if n_rows % t:
            continue
        if num_cores >= 2 and (n_rows // t) % 2:
            if best_odd is None:
                best_odd = t     # divisor but odd step count; keep looking
            continue
        return t
    return best_odd if best_odd is not None else cap


def fold_patch_merging_params(ln_gamma, ln_beta, lin_weight, patch_size, dim,
                              compute_dtype=jnp.bfloat16):
    """Fold the LayerNorm affine into the projection.  Call ONCE at parameter
    load time (hoisted out of the per-forward trace).

    Returns:
      w3:       (p, p*C, out_dim) = gamma[:,None]*W.T regrouped by p1 slice
      bias_row: (1, out_dim) f32  = beta @ W.T
    """
    out_dim, patch_dim = lin_weight.shape
    assert patch_dim == dim * patch_size ** 2
    assert ln_gamma.shape == (patch_dim,) and ln_beta.shape == (patch_dim,)
    a = ln_gamma.astype(jnp.float32)[:, None] * lin_weight.T.astype(jnp.float32)
    w3 = a.reshape(patch_size, patch_size * dim, out_dim).astype(compute_dtype)
    bias_row = (ln_beta.astype(jnp.float32)
                @ lin_weight.T.astype(jnp.float32)).reshape(1, out_dim)
    return w3, bias_row


def patch_merging_apply(x, patch_size, w3, bias_row):
    """PatchMerging forward with pre-folded params.
    x: (B, H*W, C) -> (B, (H/p)*(W/p), out_dim)."""
    B, L, C = x.shape
    H = round(math.sqrt(L))
    assert H * H == L, "token count must be a perfect square"
    p = patch_size
    assert H % p == 0
    p_, pC, out_dim = w3.shape
    assert p_ == p and pC == p * C, "folded weight does not match x / patch_size"
    patch_dim = p * pC
    hp = wp = H // p
    WC = H * C                    # lanes of one pixel row inside the band
    d_in = p * WC                 # packed band width
    d_out = wp * out_dim          # lane-dense output width
    n_rows = B * hp
    out_dtype = x.dtype
    compute_dtype = w3.dtype

    x2 = x.reshape(n_rows, d_in)  # contiguity-preserving, no HBM copy

    # Generation-aware VMEM sizing (128 MiB v5e/v6e vs 64 MiB v7x).
    vmem_cap, num_cores = _tpu_hw_info()
    vmem_limit = int(max(32 << 20, min(96 << 20, (vmem_cap * 3) // 4)))
    # Resident operands are double-buffered by BlockSpec even with a constant
    # index_map -> count them twice.
    resident = 2 * (w3.size * jnp.dtype(compute_dtype).itemsize
                    + bias_row.size * 4)
    # Per-row VMEM: double-buffered streamed x/out blocks + in-kernel f32
    # intermediates (f32 band copy, centered slices, accumulators).
    row_bytes = (2 * d_in * jnp.dtype(x.dtype).itemsize
                 + 2 * d_out * jnp.dtype(out_dtype).itemsize
                 + 2 * d_in * 4
                 + 2 * d_out * 4)
    budget = max(8 * row_bytes, int(vmem_limit * 0.7) - resident)
    tile = _pick_row_tile(n_rows, row_bytes, budget, num_cores)

    pad = (-n_rows) % tile
    if pad:  # rows are independent -> pad instead of one giant block
        x2 = jnp.pad(x2, ((0, pad), (0, 0)))
    n_rows_p = n_rows + pad

    kernel = functools.partial(_pm_kernel, p=p, pC=pC, WC=WC, wp=wp,
                               out_dim=out_dim, patch_dim=patch_dim,
                               compute_dtype=compute_dtype)

    flops = 2 * n_rows * wp * patch_dim * out_dim + 6 * n_rows * d_in
    bytes_accessed = (x2.size * jnp.dtype(x.dtype).itemsize
                      + w3.size * jnp.dtype(compute_dtype).itemsize
                      + bias_row.size * 4
                      + n_rows_p * d_out * jnp.dtype(out_dtype).itemsize)

    out2 = pl.pallas_call(
        kernel,
        out_shape=jax.ShapeDtypeStruct((n_rows_p, d_out), out_dtype),
        grid_spec=pltpu.PrefetchScalarGridSpec(
            num_scalar_prefetch=0,
            grid=(n_rows_p // tile,),
            in_specs=[
                pl.BlockSpec((tile, d_in), lambda i: (i, 0)),
                pl.BlockSpec(w3.shape, lambda i: (0, 0, 0)),      # resident
                pl.BlockSpec(bias_row.shape, lambda i: (0, 0)),   # resident
            ],
            out_specs=pl.BlockSpec((tile, d_out), lambda i: (i, 0)),
        ),
        compiler_params=pltpu.CompilerParams(
            dimension_semantics=("parallel",),
            vmem_limit_bytes=vmem_limit,
        ),
        cost_estimate=pl.CostEstimate(
            flops=int(flops),
            transcendentals=int(n_rows * wp),
            bytes_accessed=int(bytes_accessed),
        ),
    )(x2, w3, bias_row)

    if pad:
        out2 = out2[:n_rows]
    return out2.reshape(B, hp * wp, out_dim)


def patch_merging_forward(x, patch_size, ln_gamma, ln_beta, lin_weight, *,
                          compute_dtype=jnp.bfloat16):
    """Convenience one-shot wrapper (fold + apply).  Prefer folding once via
    fold_patch_merging_params and calling patch_merging_apply repeatedly."""
    dim = x.shape[-1]
    w3, bias_row = fold_patch_merging_params(ln_gamma, ln_beta, lin_weight,
                                             patch_size, dim,
                                             compute_dtype=compute_dtype)
    return patch_merging_apply(x, patch_size, w3, bias_row)


# ----------------------------------------------------------------------------
# Pure-JAX reference
# ----------------------------------------------------------------------------
def _patch_merge_rearrange(x, patch_size):
    """einops 'b (h p1) (w p2) c -> b (h w) (p1 p2 c)' for x: (B, H*W, C)."""
    B, L, C = x.shape
    H = round(math.sqrt(L))
    assert H * H == L
    p = patch_size
    x = x.reshape(B, H // p, p, H // p, p, C)      # b h p1 w p2 c
    x = jnp.transpose(x, (0, 1, 3, 2, 4, 5))       # b h w p1 p2 c
    return x.reshape(B, (H // p) * (H // p), p * p * C)


def _reference(x, patch_size, ln_gamma, ln_beta, lin_weight):
    xm = _patch_merge_rearrange(x, patch_size)
    mean = jnp.mean(xm, axis=-1, keepdims=True)
    var = jnp.mean((xm - mean) ** 2, axis=-1, keepdims=True)
    xn = (xm - mean) / jnp.sqrt(var + LN_EPS) * ln_gamma + ln_beta
    return jnp.einsum("bnd,od->bno", xn, lin_weight)


# ----------------------------------------------------------------------------
# Demo / self-test
# ----------------------------------------------------------------------------
if __name__ == "__main__":
    # Shapes consistent with the module's forward:
    #   x: (B, H*W, dim), H = W = 16, dim = 4, patch_size = 2, out_dim = 32.
    B, H, dim = 2, 16, 4
    patch_size = 2
    out_dim = 32
    patch_dim = dim * patch_size ** 2

    key = jax.random.PRNGKey(0)
    k_x, k_w, k_g, k_b = jax.random.split(key, 4)
    x = jax.random.normal(k_x, (B, H * H, dim), dtype=jnp.float32)
    # Deterministic synthetic parameters (no checkpoint loading).
    lin_weight = (jax.random.normal(k_w, (out_dim, patch_dim), dtype=jnp.float32)
                  * (1.0 / math.sqrt(patch_dim)))
    ln_gamma = 1.0 + 0.01 * jax.random.normal(k_g, (patch_dim,), dtype=jnp.float32)
    ln_beta = 0.01 * jax.random.normal(k_b, (patch_dim,), dtype=jnp.float32)

    ref = _reference(x, patch_size, ln_gamma, ln_beta, lin_weight)
    n_out = (H // patch_size) ** 2

    apply_fn = jax.jit(patch_merging_apply, static_argnums=(1,))

    # 1) Default path: bf16 matmul operands (LN stats stay f32), weights folded
    #    once outside the forward.
    w3_bf16, bias_row = fold_patch_merging_params(
        ln_gamma, ln_beta, lin_weight, patch_size, dim,
        compute_dtype=jnp.bfloat16)
    out_bf16 = jax.block_until_ready(apply_fn(x, patch_size, w3_bf16, bias_row))
    assert out_bf16.shape == (B, n_out, out_dim), out_bf16.shape
    err_bf16 = float(jnp.max(jnp.abs(out_bf16 - ref)))
    assert jnp.allclose(out_bf16, ref, atol=6e-2, rtol=6e-2), err_bf16

    # 2) f32 matmul operands (tolerance leaves slack for MXU f32 pass behaviour
    #    vs the XLA reference einsum).
    w3_f32, bias_row_f32 = fold_patch_merging_params(
        ln_gamma, ln_beta, lin_weight, patch_size, dim,
        compute_dtype=jnp.float32)
    out_f32 = jax.block_until_ready(apply_fn(x, patch_size, w3_f32, bias_row_f32))
    assert out_f32.shape == (B, n_out, out_dim), out_f32.shape
    err_f32 = float(jnp.max(jnp.abs(out_f32 - ref)))
    assert jnp.allclose(out_f32, ref, atol=5e-3, rtol=5e-3), err_f32

    print("KERNEL_OK")
</pallas_src>

<mosaic_0001>
module attributes {stable_mosaic.version = 11 : i64} {
  func.func @_pm_kernel(%arg0: i32, %arg1: memref<16x128xf32, #tpu.memory_space<vmem>>, %arg2: memref<2x8x32xbf16, #tpu.memory_space<vmem>>, %arg3: memref<1x32xf32, #tpu.memory_space<vmem>>, %arg4: memref<16x256xf32, #tpu.memory_space<vmem>>) attributes {dimension_semantics = [#tpu.dimension_semantics<parallel>], iteration_bounds = array<i64: 1>, scalar_prefetch = 0 : i64, scratch_operands = 0 : i64, tpu.core_type = #tpu.core_type<tc>, window_params = [{transform_indices = @transform_0, window_bounds = array<i64: 16, 128>}, {pipeline_mode = #tpu.pipeline_mode<synchronous>, transform_indices = @transform_1, window_bounds = array<i64: 2, 8, 32>}, {pipeline_mode = #tpu.pipeline_mode<synchronous>, transform_indices = @transform_2, window_bounds = array<i64: 1, 32>}, {transform_indices = @transform_3, window_bounds = array<i64: 16, 256>}]} {
    %c0 = arith.constant 0 : index
    %c0_0 = arith.constant 0 : index
    %0 = vector.load %arg1[%c0, %c0_0] : memref<16x128xf32, #tpu.memory_space<vmem>>, vector<16x128xf32>
    %c0_1 = arith.constant 0 : index
    %c0_2 = arith.constant 0 : index
    %c0_3 = arith.constant 0 : index
    %1 = vector.load %arg2[%c0_1, %c0_2, %c0_3] : memref<2x8x32xbf16, #tpu.memory_space<vmem>>, vector<2x8x32xbf16>
    %c0_4 = arith.constant 0 : index
    %c0_5 = arith.constant 0 : index
    %2 = vector.load %arg3[%c0_4, %c0_5] : memref<1x32xf32, #tpu.memory_space<vmem>>, vector<1x32xf32>
    %3 = vector.extract_strided_slice %0 {offsets = [0, 0], sizes = [16, 8], strides = [1, 1]} : vector<16x128xf32> to vector<16x8xf32>
    %4 = vector.extract_strided_slice %0 {offsets = [0, 64], sizes = [16, 8], strides = [1, 1]} : vector<16x128xf32> to vector<16x8xf32>
    %cst = arith.constant dense<0.000000e+00> : vector<16xf32>
    %5 = vector.multi_reduction <add>, %3, %cst [1] : vector<16x8xf32> to vector<16xf32>
    %6 = vector.shape_cast %5 : vector<16xf32> to vector<16x1xf32>
    %cst_6 = arith.constant 0.000000e+00 : f32
    %7 = vector.broadcast %cst_6 : f32 to vector<16x1xf32>
    %8 = arith.addf %7, %6 : vector<16x1xf32>
    %cst_7 = arith.constant dense<0.000000e+00> : vector<16xf32>
    %9 = vector.multi_reduction <add>, %4, %cst_7 [1] : vector<16x8xf32> to vector<16xf32>
    %10 = vector.shape_cast %9 : vector<16xf32> to vector<16x1xf32>
    %11 = arith.addf %8, %10 : vector<16x1xf32>
    %cst_8 = arith.constant 6.250000e-02 : f32
    %12 = vector.broadcast %cst_8 : f32 to vector<16x1xf32>
    %13 = arith.mulf %11, %12 : vector<16x1xf32>
    %14 = vector.broadcast %13 : vector<16x1xf32> to vector<16x8xf32>
    %15 = arith.subf %3, %14 : vector<16x8xf32>
    %16 = vector.broadcast %13 : vector<16x1xf32> to vector<16x8xf32>
    %17 = arith.subf %4, %16 : vector<16x8xf32>
    %18 = arith.mulf %15, %15 : vector<16x8xf32>
    %cst_9 = arith.constant dense<0.000000e+00> : vector<16xf32>
    %19 = vector.multi_reduction <add>, %18, %cst_9 [1] : vector<16x8xf32> to vector<16xf32>
    %20 = vector.shape_cast %19 : vector<16xf32> to vector<16x1xf32>
    %cst_10 = arith.constant 0.000000e+00 : f32
    %21 = vector.broadcast %cst_10 : f32 to vector<16x1xf32>
    %22 = arith.addf %21, %20 : vector<16x1xf32>
    %23 = arith.mulf %17, %17 : vector<16x8xf32>
    %cst_11 = arith.constant dense<0.000000e+00> : vector<16xf32>
    %24 = vector.multi_reduction <add>, %23, %cst_11 [1] : vector<16x8xf32> to vector<16xf32>
    %25 = vector.shape_cast %24 : vector<16xf32> to vector<16x1xf32>
    %26 = arith.addf %22, %25 : vector<16x1xf32>
    %cst_12 = arith.constant 6.250000e-02 : f32
    %27 = vector.broadcast %cst_12 : f32 to vector<16x1xf32>
    %28 = arith.mulf %26, %27 : vector<16x1xf32>
    %cst_13 = arith.constant 9.99999974E-6 : f32
    %29 = vector.broadcast %cst_13 : f32 to vector<16x1xf32>
    %30 = arith.addf %28, %29 : vector<16x1xf32>
    %31 = math.rsqrt %30 : vector<16x1xf32>
    %32 = vector.broadcast %31 : vector<16x1xf32> to vector<16x8xf32>
    %33 = arith.mulf %15, %32 : vector<16x8xf32>
    %34 = arith.truncf %33 : vector<16x8xf32> to vector<16x8xbf16>
    %35 = vector.extract_strided_slice %1 {offsets = [0, 0, 0], sizes = [1, 8, 32], strides = [1, 1, 1]} : vector<2x8x32xbf16> to vector<1x8x32xbf16>
    %36 = vector.shape_cast %35 : vector<1x8x32xbf16> to vector<8x32xbf16>
    %cst_14 = arith.constant dense<0.000000e+00> : vector<16x32xf32>
    %37 = tpu.matmul %34, %36, %cst_14 {dimension_numbers = #tpu.dot_dimension_numbers<[1], [0], [0], [1], [0, 0, 1, 1], [], []>} : vector<16x8xbf16>, vector<8x32xbf16>, vector<16x32xf32> -> vector<16x32xf32>
    %38 = vector.broadcast %2 : vector<1x32xf32> to vector<16x32xf32>
    %39 = arith.addf %38, %37 : vector<16x32xf32>
    %40 = vector.broadcast %31 : vector<16x1xf32> to vector<16x8xf32>
    %41 = arith.mulf %17, %40 : vector<16x8xf32>
    %42 = arith.truncf %41 : vector<16x8xf32> to vector<16x8xbf16>
    %43 = vector.extract_strided_slice %1 {offsets = [1, 0, 0], sizes = [1, 8, 32], strides = [1, 1, 1]} : vector<2x8x32xbf16> to vector<1x8x32xbf16>
    %44 = vector.shape_cast %43 : vector<1x8x32xbf16> to vector<8x32xbf16>
    %cst_15 = arith.constant dense<0.000000e+00> : vector<16x32xf32>
    %45 = tpu.matmul %42, %44, %cst_15 {dimension_numbers = #tpu.dot_dimension_numbers<[1], [0], [0], [1], [0, 0, 1, 1], [], []>} : vector<16x8xbf16>, vector<8x32xbf16>, vector<16x32xf32> -> vector<16x32xf32>
    %46 = arith.addf %39, %45 : vector<16x32xf32>
    %c0_16 = arith.constant 0 : index
    %c0_17 = arith.constant 0 : index
    %47 = vector.load %arg4[%c0_16, %c0_17] : memref<16x256xf32, #tpu.memory_space<vmem>>, vector<16x32xf32>
    tpu.vector_store %arg4[%c0_16, %c0_17], %46 {strides = array<i32>} : memref<16x256xf32, #tpu.memory_space<vmem>>, vector<16x32xf32>,
    %48 = vector.extract_strided_slice %0 {offsets = [0, 8], sizes = [16, 8], strides = [1, 1]} : vector<16x128xf32> to vector<16x8xf32>
    %49 = vector.extract_strided_slice %0 {offsets = [0, 72], sizes = [16, 8], strides = [1, 1]} : vector<16x128xf32> to vector<16x8xf32>
    %cst_18 = arith.constant dense<0.000000e+00> : vector<16xf32>
    %50 = vector.multi_reduction <add>, %48, %cst_18 [1] : vector<16x8xf32> to vector<16xf32>
    %51 = vector.shape_cast %50 : vector<16xf32> to vector<16x1xf32>
    %cst_19 = arith.constant 0.000000e+00 : f32
    %52 = vector.broadcast %cst_19 : f32 to vector<16x1xf32>
    %53 = arith.addf %52, %51 : vector<16x1xf32>
    %cst_20 = arith.constant dense<0.000000e+00> : vector<16xf32>
    %54 = vector.multi_reduction <add>, %49, %cst_20 [1] : vector<16x8xf32> to vector<16xf32>
    %55 = vector.shape_cast %54 : vector<16xf32> to vector<16x1xf32>
    %56 = arith.addf %53, %55 : vector<16x1xf32>
    %cst_21 = arith.constant 6.250000e-02 : f32
    %57 = vector.broadcast %cst_21 : f32 to vector<16x1xf32>
    %58 = arith.mulf %56, %57 : vector<16x1xf32>
    %59 = vector.broadcast %58 : vector<16x1xf32> to vector<16x8xf32>
    %60 = arith.subf %48, %59 : vector<16x8xf32>
    %61 = vector.broadcast %58 : vector<16x1xf32> to vector<16x8xf32>
    %62 = arith.subf %49, %61 : vector<16x8xf32>
    %63 = arith.mulf %60, %60 : vector<16x8xf32>
    %cst_22 = arith.constant dense<0.000000e+00> : vector<16xf32>
    %64 = vector.multi_reduction <add>, %63, %cst_22 [1] : vector<16x8xf32> to vector<16xf32>
    %65 = vector.shape_cast %64 : vector<16xf32> to vector<16x1xf32>
    %cst_23 = arith.constant 0.000000e+00 : f32
    %66 = vector.broadcast %cst_23 : f32 to vector<16x1xf32>
    %67 = arith.addf %66, %65 : vector<16x1xf32>
    %68 = arith.mulf %62, %62 : vector<16x8xf32>
    %cst_24 = arith.constant dense<0.000000e+00> : vector<16xf32>
    %69 = vector.multi_reduction <add>, %68, %cst_24 [1] : vector<16x8xf32> to vector<16xf32>
    %70 = vector.shape_cast %69 : vector<16xf32> to vector<16x1xf32>
    %71 = arith.addf %67, %70 : vector<16x1xf32>
    %cst_25 = arith.constant 6.250000e-02 : f32
    %72 = vector.broadcast %cst_25 : f32 to vector<16x1xf32>
    %73 = arith.mulf %71, %72 : vector<16x1xf32>
    %cst_26 = arith.constant 9.99999974E-6 : f32
    %74 = vector.broadcast %cst_26 : f32 to vector<16x1xf32>
    %75 = arith.addf %73, %74 : vector<16x1xf32>
    %76 = math.rsqrt %75 : vector<16x1xf32>
    %77 = vector.broadcast %76 : vector<16x1xf32> to vector<16x8xf32>
    %78 = arith.mulf %60, %77 : vector<16x8xf32>
    %79 = arith.truncf %78 : vector<16x8xf32> to vector<16x8xbf16>
    %80 = vector.extract_strided_slice %1 {offsets = [0, 0, 0], sizes = [1, 8, 32], strides = [1, 1, 1]} : vector<2x8x32xbf16> to vector<1x8x32xbf16>
    %81 = vector.shape_cast %80 : vector<1x8x32xbf16> to vector<8x32xbf16>
    %cst_27 = arith.constant dense<0.000000e+00> : vector<16x32xf32>
    %82 = tpu.matmul %79, %81, %cst_27 {dimension_numbers = #tpu.dot_dimension_numbers<[1], [0], [0], [1], [0, 0, 1, 1], [], []>} : vector<16x8xbf16>, vector<8x32xbf16>, vector<16x32xf32> -> vector<16x32xf32>
    %83 = vector.broadcast %2 : vector<1x32xf32> to vector<16x32xf32>
    %84 = arith.addf %83, %82 : vector<16x32xf32>
    %85 = vector.broadcast %76 : vector<16x1xf32> to vector<16x8xf32>
    %86 = arith.mulf %62, %85 : vector<16x8xf32>
    %87 = arith.truncf %86 : vector<16x8xf32> to vector<16x8xbf16>
    %88 = vector.extract_strided_slice %1 {offsets = [1, 0, 0], sizes = [1, 8, 32], strides = [1, 1, 1]} : vector<2x8x32xbf16> to vector<1x8x32xbf16>
    %89 = vector.shape_cast %88 : vector<1x8x32xbf16> to vector<8x32xbf16>
    %cst_28 = arith.constant dense<0.000000e+00> : vector<16x32xf32>
    %90 = tpu.matmul %87, %89, %cst_28 {dimension_numbers = #tpu.dot_dimension_numbers<[1], [0], [0], [1], [0, 0, 1, 1], [], []>} : vector<16x8xbf16>, vector<8x32xbf16>, vector<16x32xf32> -> vector<16x32xf32>
    %91 = arith.addf %84, %90 : vector<16x32xf32>
    %c0_29 = arith.constant 0 : index
    %c32 = arith.constant 32 : index
    %92 = vector.load %arg4[%c0_29, %c32] : memref<16x256xf32, #tpu.memory_space<vmem>>, vector<16x32xf32>
    tpu.vector_store %arg4[%c0_29, %c32], %91 {strides = array<i32>} : memref<16x256xf32, #tpu.memory_space<vmem>>, vector<16x32xf32>,
    %93 = vector.extract_strided_slice %0 {offsets = [0, 16], sizes = [16, 8], strides = [1, 1]} : vector<16x128xf32> to vector<16x8xf32>
    %94 = vector.extract_strided_slice %0 {offsets = [0, 80], sizes = [16, 8], strides = [1, 1]} : vector<16x128xf32> to vector<16x8xf32>
    %cst_30 = arith.constant dense<0.000000e+00> : vector<16xf32>
    %95 = vector.multi_reduction <add>, %93, %cst_30 [1] : vector<16x8xf32> to vector<16xf32>
    %96 = vector.shape_cast %95 : vector<16xf32> to vector<16x1xf32>
    %cst_31 = arith.constant 0.000000e+00 : f32
    %97 = vector.broadcast %cst_31 : f32 to vector<16x1xf32>
    %98 = arith.addf %97, %96 : vector<16x1xf32>
    %cst_32 = arith.constant dense<0.000000e+00> : vector<16xf32>
    %99 = vector.multi_reduction <add>, %94, %cst_32 [1] : vector<16x8xf32> to vector<16xf32>
    %100 = vector.shape_cast %99 : vector<16xf32> to vector<16x1xf32>
    %101 = arith.addf %98, %100 : vector<16x1xf32>
    %cst_33 = arith.constant 6.250000e-02 : f32
    %102 = vector.broadcast %cst_33 : f32 to vector<16x1xf32>
    %103 = arith.mulf %101, %102 : vector<16x1xf32>
    %104 = vector.broadcast %103 : vector<16x1xf32> to vector<16x8xf32>
    %105 = arith.subf %93, %104 : vector<16x8xf32>
    %106 = vector.broadcast %103 : vector<16x1xf32> to vector<16x8xf32>
    %107 = arith.subf %94, %106 : vector<16x8xf32>
    %108 = arith.mulf %105, %105 : vector<16x8xf32>
    %cst_34 = arith.constant dense<0.000000e+00> : vector<16xf32>
    %109 = vector.multi_reduction <add>, %108, %cst_34 [1] : vector<16x8xf32> to vector<16xf32>
    %110 = vector.shape_cast %109 : vector<16xf32> to vector<16x1xf32>
    %cst_35 = arith.constant 0.000000e+00 : f32
    %111 = vector.broadcast %cst_35 : f32 to vector<16x1xf32>
    %112 = arith.addf %111, %110 : vector<16x1xf32>
    %113 = arith.mulf %107, %107 : vector<16x8xf32>
    %cst_36 = arith.constant dense<0.000000e+00> : vector<16xf32>
    %114 = vector.multi_reduction <add>, %113, %cst_36 [1] : vector<16x8xf32> to vector<16xf32>
    %115 = vector.shape_cast %114 : vector<16xf32> to vector<16x1xf32>
    %116 = arith.addf %112, %115 : vector<16x1xf32>
    %cst_37 = arith.constant 6.250000e-02 : f32
    %117 = vector.broadcast %cst_37 : f32 to vector<16x1xf32>
    %118 = arith.mulf %116, %117 : vector<16x1xf32>
    %cst_38 = arith.constant 9.99999974E-6 : f32
    %119 = vector.broadcast %cst_38 : f32 to vector<16x1xf32>
    %120 = arith.addf %118, %119 : vector<16x1xf32>
    %121 = math.rsqrt %120 : vector<16x1xf32>
    %122 = vector.broadcast %121 : vector<16x1xf32> to vector<16x8xf32>
    %123 = arith.mulf %105, %122 : vector<16x8xf32>
    %124 = arith.truncf %123 : vector<16x8xf32> to vector<16x8xbf16>
    %125 = vector.extract_strided_slice %1 {offsets = [0, 0, 0], sizes = [1, 8, 32], strides = [1, 1, 1]} : vector<2x8x32xbf16> to vector<1x8x32xbf16>
    %126 = vector.shape_cast %125 : vector<1x8x32xbf16> to vector<8x32xbf16>
    %cst_39 = arith.constant dense<0.000000e+00> : vector<16x32xf32>
    %127 = tpu.matmul %124, %126, %cst_39 {dimension_numbers = #tpu.dot_dimension_numbers<[1], [0], [0], [1], [0, 0, 1, 1], [], []>} : vector<16x8xbf16>, vector<8x32xbf16>, vector<16x32xf32> -> vector<16x32xf32>
    %128 = vector.broadcast %2 : vector<1x32xf32> to vector<16x32xf32>
    %129 = arith.addf %128, %127 : vector<16x32xf32>
    %130 = vector.broadcast %121 : vector<16x1xf32> to vector<16x8xf32>
    %131 = arith.mulf %107, %130 : vector<16x8xf32>
    %132 = arith.truncf %131 : vector<16x8xf32> to vector<16x8xbf16>
    %133 = vector.extract_strided_slice %1 {offsets = [1, 0, 0], sizes = [1, 8, 32], strides = [1, 1, 1]} : vector<2x8x32xbf16> to vector<1x8x32xbf16>
    %134 = vector.shape_cast %133 : vector<1x8x32xbf16> to vector<8x32xbf16>
    %cst_40 = arith.constant dense<0.000000e+00> : vector<16x32xf32>
    %135 = tpu.matmul %132, %134, %cst_40 {dimension_numbers = #tpu.dot_dimension_numbers<[1], [0], [0], [1], [0, 0, 1, 1], [], []>} : vector<16x8xbf16>, vector<8x32xbf16>, vector<16x32xf32> -> vector<16x32xf32>
    %136 = arith.addf %129, %135 : vector<16x32xf32>
    %c0_41 = arith.constant 0 : index
    %c64 = arith.constant 64 : index
    %137 = vector.load %arg4[%c0_41, %c64] : memref<16x256xf32, #tpu.memory_space<vmem>>, vector<16x32xf32>
    tpu.vector_store %arg4[%c0_41, %c64], %136 {strides = array<i32>} : memref<16x256xf32, #tpu.memory_space<vmem>>, vector<16x32xf32>,
    %138 = vector.extract_strided_slice %0 {offsets = [0, 24], sizes = [16, 8], strides = [1, 1]} : vector<16x128xf32> to vector<16x8xf32>
    %139 = vector.extract_strided_slice %0 {offsets = [0, 88], sizes = [16, 8], strides = [1, 1]} : vector<16x128xf32> to vector<16x8xf32>
    %cst_42 = arith.constant dense<0.000000e+00> : vector<16xf32>
    %140 = vector.multi_reduction <add>, %138, %cst_42 [1] : vector<16x8xf32> to vector<16xf32>
    %141 = vector.shape_cast %140 : vector<16xf32> to vector<16x1xf32>
    %cst_43 = arith.constant 0.000000e+00 : f32
    %142 = vector.broadcast %cst_43 : f32 to vector<16x1xf32>
    %143 = arith.addf %142, %141 : vector<16x1xf32>
    %cst_44 = arith.constant dense<0.000000e+00> : vector<16xf32>
    %144 = vector.multi_reduction <add>, %139, %cst_44 [1] : vector<16x8xf32> to vector<16xf32>
    %145 = vector.shape_cast %144 : vector<16xf32> to vector<16x1xf32>
    %146 = arith.addf %143, %145 : vector<16x1xf32>
    %cst_45 = arith.constant 6.250000e-02 : f32
    %147 = vector.broadcast %cst_45 : f32 to vector<16x1xf32>
    %148 = arith.mulf %146, %147 : vector<16x1xf32>
    %149 = vector.broadcast %148 : vector<16x1xf32> to vector<16x8xf32>
    %150 = arith.subf %138, %149 : vector<16x8xf32>
    %151 = vector.broadcast %148 : vector<16x1xf32> to vector<16x8xf32>
    %152 = arith.subf %139, %151 : vector<16x8xf32>
    %153 = arith.mulf %150, %150 : vector<16x8xf32>
    %cst_46 = arith.constant dense<0.000000e+00> : vector<16xf32>
    %154 = vector.multi_reduction <add>, %153, %cst_46 [1] : vector<16x8xf32> to vector<16xf32>
    %155 = vector.shape_cast %154 : vector<16xf32> to vector<16x1xf32>
    %cst_47 = arith.constant 0.000000e+00 : f32
    %156 = vector.broadcast %cst_47 : f32 to vector<16x1xf32>
    %157 = arith.addf %156, %155 : vector<16x1xf32>
    %158 = arith.mulf %152, %152 : vector<16x8xf32>
    %cst_48 = arith.constant dense<0.000000e+00> : vector<16xf32>
    %159 = vector.multi_reduction <add>, %158, %cst_48 [1] : vector<16x8xf32> to vector<16xf32>
    %160 = vector.shape_cast %159 : vector<16xf32> to vector<16x1xf32>
    %161 = arith.addf %157, %160 : vector<16x1xf32>
    %cst_49 = arith.constant 6.250000e-02 : f32
    %162 = vector.broadcast %cst_49 : f32 to vector<16x1xf32>
    %163 = arith.mulf %161, %162 : vector<16x1xf32>
    %cst_50 = arith.constant 9.99999974E-6 : f32
    %164 = vector.broadcast %cst_50 : f32 to vector<16x1xf32>
    %165 = arith.addf %163, %164 : vector<16x1xf32>
    %166 = math.rsqrt %165 : vector<16x1xf32>
    %167 = vector.broadcast %166 : vector<16x1xf32> to vector<16x8xf32>
    %168 = arith.mulf %150, %167 : vector<16x8xf32>
    %169 = arith.truncf %168 : vector<16x8xf32> to vector<16x8xbf16>
    %170 = vector.extract_strided_slice %1 {offsets = [0, 0, 0], sizes = [1, 8, 32], strides = [1, 1, 1]} : vector<2x8x32xbf16> to vector<1x8x32xbf16>
    %171 = vector.shape_cast %170 : vector<1x8x32xbf16> to vector<8x32xbf16>
    %cst_51 = arith.constant dense<0.000000e+00> : vector<16x32xf32>
    %172 = tpu.matmul %169, %171, %cst_51 {dimension_numbers = #tpu.dot_dimension_numbers<[1], [0], [0], [1], [0, 0, 1, 1], [], []>} : vector<16x8xbf16>, vector<8x32xbf16>, vector<16x32xf32> -> vector<16x32xf32>
    %173 = vector.broadcast %2 : vector<1x32xf32> to vector<16x32xf32>
    %174 = arith.addf %173, %172 : vector<16x32xf32>
    %175 = vector.broadcast %166 : vector<16x1xf32> to vector<16x8xf32>
    %176 = arith.mulf %152, %175 : vector<16x8xf32>
    %177 = arith.truncf %176 : vector<16x8xf32> to vector<16x8xbf16>
    %178 = vector.extract_strided_slice %1 {offsets = [1, 0, 0], sizes = [1, 8, 32], strides = [1, 1, 1]} : vector<2x8x32xbf16> to vector<1x8x32xbf16>
    %179 = vector.shape_cast %178 : vector<1x8x32xbf16> to vector<8x32xbf16>
    %cst_52 = arith.constant dense<0.000000e+00> : vector<16x32xf32>
    %180 = tpu.matmul %177, %179, %cst_52 {dimension_numbers = #tpu.dot_dimension_numbers<[1], [0], [0], [1], [0, 0, 1, 1], [], []>} : vector<16x8xbf16>, vector<8x32xbf16>, vector<16x32xf32> -> vector<16x32xf32>
    %181 = arith.addf %174, %180 : vector<16x32xf32>
    %c0_53 = arith.constant 0 : index
    %c96 = arith.constant 96 : index
    %182 = vector.load %arg4[%c0_53, %c96] : memref<16x256xf32, #tpu.memory_space<vmem>>, vector<16x32xf32>
    tpu.vector_store %arg4[%c0_53, %c96], %181 {strides = array<i32>} : memref<16x256xf32, #tpu.memory_space<vmem>>, vector<16x32xf32>,
    %183 = vector.extract_strided_slice %0 {offsets = [0, 32], sizes = [16, 8], strides = [1, 1]} : vector<16x128xf32> to vector<16x8xf32>
    %184 = vector.extract_strided_slice %0 {offsets = [0, 96], sizes = [16, 8], strides = [1, 1]} : vector<16x128xf32> to vector<16x8xf32>
    %cst_54 = arith.constant dense<0.000000e+00> : vector<16xf32>
    %185 = vector.multi_reduction <add>, %183, %cst_54 [1] : vector<16x8xf32> to vector<16xf32>
    %186 = vector.shape_cast %185 : vector<16xf32> to vector<16x1xf32>
    %cst_55 = arith.constant 0.000000e+00 : f32
    %187 = vector.broadcast %cst_55 : f32 to vector<16x1xf32>
    %188 = arith.addf %187, %186 : vector<16x1xf32>
    %cst_56 = arith.constant dense<0.000000e+00> : vector<16xf32>
    %189 = vector.multi_reduction <add>, %184, %cst_56 [1] : vector<16x8xf32> to vector<16xf32>
    %190 = vector.shape_cast %189 : vector<16xf32> to vector<16x1xf32>
    %191 = arith.addf %188, %190 : vector<16x1xf32>
    %cst_57 = arith.constant 6.250000e-02 : f32
    %192 = vector.broadcast %cst_57 : f32 to vector<16x1xf32>
    %193 = arith.mulf %191, %192 : vector<16x1xf32>
    %194 = vector.broadcast %193 : vector<16x1xf32> to vector<16x8xf32>
    %195 = arith.subf %183, %194 : vector<16x8xf32>
    %196 = vector.broadcast %193 : vector<16x1xf32> to vector<16x8xf32>
    %197 = arith.subf %184, %196 : vector<16x8xf32>
    %198 = arith.mulf %195, %195 : vector<16x8xf32>
    %cst_58 = arith.constant dense<0.000000e+00> : vector<16xf32>
    %199 = vector.multi_reduction <add>, %198, %cst_58 [1] : vector<16x8xf32> to vector<16xf32>
    %200 = vector.shape_cast %199 : vector<16xf32> to vector<16x1xf32>
    %cst_59 = arith.constant 0.000000e+00 : f32
    %201 = vector.broadcast %cst_59 : f32 to vector<16x1xf32>
    %202 = arith.addf %201, %200 : vector<16x1xf32>
    %203 = arith.mulf %197, %197 : vector<16x8xf32>
    %cst_60 = arith.constant dense<0.000000e+00> : vector<16xf32>
    %204 = vector.multi_reduction <add>, %203, %cst_60 [1] : vector<16x8xf32> to vector<16xf32>
    %205 = vector.shape_cast %204 : vector<16xf32> to vector<16x1xf32>
    %206 = arith.addf %202, %205 : vector<16x1xf32>
    %cst_61 = arith.constant 6.250000e-02 : f32
    %207 = vector.broadcast %cst_61 : f32 to vector<16x1xf32>
    %208 = arith.mulf %206, %207 : vector<16x1xf32>
    %cst_62 = arith.constant 9.99999974E-6 : f32
    %209 = vector.broadcast %cst_62 : f32 to vector<16x1xf32>
    %210 = arith.addf %208, %209 : vector<16x1xf32>
    %211 = math.rsqrt %210 : vector<16x1xf32>
    %212 = vector.broadcast %211 : vector<16x1xf32> to vector<16x8xf32>
    %213 = arith.mulf %195, %212 : vector<16x8xf32>
    %214 = arith.truncf %213 : vector<16x8xf32> to vector<16x8xbf16>
    %215 = vector.extract_strided_slice %1 {offsets = [0, 0, 0], sizes = [1, 8, 32], strides = [1, 1, 1]} : vector<2x8x32xbf16> to vector<1x8x32xbf16>
    %216 = vector.shape_cast %215 : vector<1x8x32xbf16> to vector<8x32xbf16>
    %cst_63 = arith.constant dense<0.000000e+00> : vector<16x32xf32>
    %217 = tpu.matmul %214, %216, %cst_63 {dimension_numbers = #tpu.dot_dimension_numbers<[1], [0], [0], [1], [0, 0, 1, 1], [], []>} : vector<16x8xbf16>, vector<8x32xbf16>, vector<16x32xf32> -> vector<16x32xf32>
    %218 = vector.broadcast %2 : vector<1x32xf32> to vector<16x32xf32>
    %219 = arith.addf %218, %217 : vector<16x32xf32>
    %220 = vector.broadcast %211 : vector<16x1xf32> to vector<16x8xf32>
    %221 = arith.mulf %197, %220 : vector<16x8xf32>
    %222 = arith.truncf %221 : vector<16x8xf32> to vector<16x8xbf16>
    %223 = vector.extract_strided_slice %1 {offsets = [1, 0, 0], sizes = [1, 8, 32], strides = [1, 1, 1]} : vector<2x8x32xbf16> to vector<1x8x32xbf16>
    %224 = vector.shape_cast %223 : vector<1x8x32xbf16> to vector<8x32xbf16>
    %cst_64 = arith.constant dense<0.000000e+00> : vector<16x32xf32>
    %225 = tpu.matmul %222, %224, %cst_64 {dimension_numbers = #tpu.dot_dimension_numbers<[1], [0], [0], [1], [0, 0, 1, 1], [], []>} : vector<16x8xbf16>, vector<8x32xbf16>, vector<16x32xf32> -> vector<16x32xf32>
    %226 = arith.addf %219, %225 : vector<16x32xf32>
    %c0_65 = arith.constant 0 : index
    %c128 = arith.constant 128 : index
    %227 = vector.load %arg4[%c0_65, %c128] : memref<16x256xf32, #tpu.memory_space<vmem>>, vector<16x32xf32>
    tpu.vector_store %arg4[%c0_65, %c128], %226 {strides = array<i32>} : memref<16x256xf32, #tpu.memory_space<vmem>>, vector<16x32xf32>,
    %228 = vector.extract_strided_slice %0 {offsets = [0, 40], sizes = [16, 8], strides = [1, 1]} : vector<16x128xf32> to vector<16x8xf32>
    %229 = vector.extract_strided_slice %0 {offsets = [0, 104], sizes = [16, 8], strides = [1, 1]} : vector<16x128xf32> to vector<16x8xf32>
    %cst_66 = arith.constant dense<0.000000e+00> : vector<16xf32>
    %230 = vector.multi_reduction <add>, %228, %cst_66 [1] : vector<16x8xf32> to vector<16xf32>
    %231 = vector.shape_cast %230 : vector<16xf32> to vector<16x1xf32>
    %cst_67 = arith.constant 0.000000e+00 : f32
    %232 = vector.broadcast %cst_67 : f32 to vector<16x1xf32>
    %233 = arith.addf %232, %231 : vector<16x1xf32>
    %cst_68 = arith.constant dense<0.000000e+00> : vector<16xf32>
    %234 = vector.multi_reduction <add>, %229, %cst_68 [1] : vector<16x8xf32> to vector<16xf32>
    %235 = vector.shape_cast %234 : vector<16xf32> to vector<16x1xf32>
    %236 = arith.addf %233, %235 : vector<16x1xf32>
    %cst_69 = arith.constant 6.250000e-02 : f32
    %237 = vector.broadcast %cst_69 : f32 to vector<16x1xf32>
    %238 = arith.mulf %236, %237 : vector<16x1xf32>
    %239 = vector.broadcast %238 : vector<16x1xf32> to vector<16x8xf32>
    %240 = arith.subf %228, %239 : vector<16x8xf32>
    %241 = vector.broadcast %238 : vector<16x1xf32> to vector<16x8xf32>
    %242 = arith.subf %229, %241 : vector<16x8xf32>
    %243 = arith.mulf %240, %240 : vector<16x8xf32>
    %cst_70 = arith.constant dense<0.000000e+00> : vector<16xf32>
    %244 = vector.multi_reduction <add>, %243, %cst_70 [1] : vector<16x8xf32> to vector<16xf32>
    %245 = vector.shape_cast %244 : vector<16xf32> to vector<16x1xf32>
    %cst_71 = arith.constant 0.000000e+00 : f32
    %246 = vector.broadcast %cst_71 : f32 to vector<16x1xf32>
    %247 = arith.addf %246, %245 : vector<16x1xf32>
    %248 = arith.mulf %242, %242 : vector<16x8xf32>
    %cst_72 = arith.constant dense<0.000000e+00> : vector<16xf32>
    %249 = vector.multi_reduction <add>, %248, %cst_72 [1] : vector<16x8xf32> to vector<16xf32>
    %250 = vector.shape_cast %249 : vector<16xf32> to vector<16x1xf32>
    %251 = arith.addf %247, %250 : vector<16x1xf32>
    %cst_73 = arith.constant 6.250000e-02 : f32
    %252 = vector.broadcast %cst_73 : f32 to vector<16x1xf32>
    %253 = arith.mulf %251, %252 : vector<16x1xf32>
    %cst_74 = arith.constant 9.99999974E-6 : f32
    %254 = vector.broadcast %cst_74 : f32 to vector<16x1xf32>
    %255 = arith.addf %253, %254 : vector<16x1xf32>
    %256 = math.rsqrt %255 : vector<16x1xf32>
    %257 = vector.broadcast %256 : vector<16x1xf32> to vector<16x8xf32>
    %258 = arith.mulf %240, %257 : vector<16x8xf32>
    %259 = arith.truncf %258 : vector<16x8xf32> to vector<16x8xbf16>
    %260 = vector.extract_strided_slice %1 {offsets = [0, 0, 0], sizes = [1, 8, 32], strides = [1, 1, 1]} : vector<2x8x32xbf16> to vector<1x8x32xbf16>
    %261 = vector.shape_cast %260 : vector<1x8x32xbf16> to vector<8x32xbf16>
    %cst_75 = arith.constant dense<0.000000e+00> : vector<16x32xf32>
    %262 = tpu.matmul %259, %261, %cst_75 {dimension_numbers = #tpu.dot_dimension_numbers<[1], [0], [0], [1], [0, 0, 1, 1], [], []>} : vector<16x8xbf16>, vector<8x32xbf16>, vector<16x32xf32> -> vector<16x32xf32>
    %263 = vector.broadcast %2 : vector<1x32xf32> to vector<16x32xf32>
    %264 = arith.addf %263, %262 : vector<16x32xf32>
    %265 = vector.broadcast %256 : vector<16x1xf32> to vector<16x8xf32>
    %266 = arith.mulf %242, %265 : vector<16x8xf32>
    %267 = arith.truncf %266 : vector<16x8xf32> to vector<16x8xbf16>
    %268 = vector.extract_strided_slice %1 {offsets = [1, 0, 0], sizes = [1, 8, 32], strides = [1, 1, 1]} : vector<2x8x32xbf16> to vector<1x8x32xbf16>
    %269 = vector.shape_cast %268 : vector<1x8x32xbf16> to vector<8x32xbf16>
    %cst_76 = arith.constant dense<0.000000e+00> : vector<16x32xf32>
    %270 = tpu.matmul %267, %269, %cst_76 {dimension_numbers = #tpu.dot_dimension_numbers<[1], [0], [0], [1], [0, 0, 1, 1], [], []>} : vector<16x8xbf16>, vector<8x32xbf16>, vector<16x32xf32> -> vector<16x32xf32>
    %271 = arith.addf %264, %270 : vector<16x32xf32>
    %c0_77 = arith.constant 0 : index
    %c160 = arith.constant 160 : index
    %272 = vector.load %arg4[%c0_77, %c160] : memref<16x256xf32, #tpu.memory_space<vmem>>, vector<16x32xf32>
    tpu.vector_store %arg4[%c0_77, %c160], %271 {strides = array<i32>} : memref<16x256xf32, #tpu.memory_space<vmem>>, vector<16x32xf32>,
    %273 = vector.extract_strided_slice %0 {offsets = [0, 48], sizes = [16, 8], strides = [1, 1]} : vector<16x128xf32> to vector<16x8xf32>
    %274 = vector.extract_strided_slice %0 {offsets = [0, 112], sizes = [16, 8], strides = [1, 1]} : vector<16x128xf32> to vector<16x8xf32>
    %cst_78 = arith.constant dense<0.000000e+00> : vector<16xf32>
    %275 = vector.multi_reduction <add>, %273, %cst_78 [1] : vector<16x8xf32> to vector<16xf32>
    %276 = vector.shape_cast %275 : vector<16xf32> to vector<16x1xf32>
    %cst_79 = arith.constant 0.000000e+00 : f32
    %277 = vector.broadcast %cst_79 : f32 to vector<16x1xf32>
    %278 = arith.addf %277, %276 : vector<16x1xf32>
    %cst_80 = arith.constant dense<0.000000e+00> : vector<16xf32>
    %279 = vector.multi_reduction <add>, %274, %cst_80 [1] : vector<16x8xf32> to vector<16xf32>
    %280 = vector.shape_cast %279 : vector<16xf32> to vector<16x1xf32>
    %281 = arith.addf %278, %280 : vector<16x1xf32>
    %cst_81 = arith.constant 6.250000e-02 : f32
    %282 = vector.broadcast %cst_81 : f32 to vector<16x1xf32>
    %283 = arith.mulf %281, %282 : vector<16x1xf32>
    %284 = vector.broadcast %283 : vector<16x1xf32> to vector<16x8xf32>
    %285 = arith.subf %273, %284 : vector<16x8xf32>
    %286 = vector.broadcast %283 : vector<16x1xf32> to vector<16x8xf32>
    %287 = arith.subf %274, %286 : vector<16x8xf32>
    %288 = arith.mulf %285, %285 : vector<16x8xf32>
    %cst_82 = arith.constant dense<0.000000e+00> : vector<16xf32>
    %289 = vector.multi_reduction <add>, %288, %cst_82 [1] : vector<16x8xf32> to vector<16xf32>
    %290 = vector.shape_cast %289 : vector<16xf32> to vector<16x1xf32>
    %cst_83 = arith.constant 0.000000e+00 : f32
    %291 = vector.broadcast %cst_83 : f32 to vector<16x1xf32>
    %292 = arith.addf %291, %290 : vector<16x1xf32>
    %293 = arith.mulf %287, %287 : vector<16x8xf32>
    %cst_84 = arith.constant dense<0.000000e+00> : vector<16xf32>
    %294 = vector.multi_reduction <add>, %293, %cst_84 [1] : vector<16x8xf32> to vector<16xf32>
    %295 = vector.shape_cast %294 : vector<16xf32> to vector<16x1xf32>
    %296 = arith.addf %292, %295 : vector<16x1xf32>
    %cst_85 = arith.constant 6.250000e-02 : f32
    %297 = vector.broadcast %cst_85 : f32 to vector<16x1xf32>
    %298 = arith.mulf %296, %297 : vector<16x1xf32>
    %cst_86 = arith.constant 9.99999974E-6 : f32
    %299 = vector.broadcast %cst_86 : f32 to vector<16x1xf32>
    %300 = arith.addf %298, %299 : vector<16x1xf32>
    %301 = math.rsqrt %300 : vector<16x1xf32>
    %302 = vector.broadcast %301 : vector<16x1xf32> to vector<16x8xf32>
    %303 = arith.mulf %285, %302 : vector<16x8xf32>
    %304 = arith.truncf %303 : vector<16x8xf32> to vector<16x8xbf16>
    %305 = vector.extract_strided_slice %1 {offsets = [0, 0, 0], sizes = [1, 8, 32], strides = [1, 1, 1]} : vector<2x8x32xbf16> to vector<1x8x32xbf16>
    %306 = vector.shape_cast %305 : vector<1x8x32xbf16> to vector<8x32xbf16>
    %cst_87 = arith.constant dense<0.000000e+00> : vector<16x32xf32>
    %307 = tpu.matmul %304, %306, %cst_87 {dimension_numbers = #tpu.dot_dimension_numbers<[1], [0], [0], [1], [0, 0, 1, 1], [], []>} : vector<16x8xbf16>, vector<8x32xbf16>, vector<16x32xf32> -> vector<16x32xf32>
    %308 = vector.broadcast %2 : vector<1x32xf32> to vector<16x32xf32>
    %309 = arith.addf %308, %307 : vector<16x32xf32>
    %310 = vector.broadcast %301 : vector<16x1xf32> to vector<16x8xf32>
    %311 = arith.mulf %287, %310 : vector<16x8xf32>
    %312 = arith.truncf %311 : vector<16x8xf32> to vector<16x8xbf16>
    %313 = vector.extract_strided_slice %1 {offsets = [1, 0, 0], sizes = [1, 8, 32], strides = [1, 1, 1]} : vector<2x8x32xbf16> to vector<1x8x32xbf16>
    %314 = vector.shape_cast %313 : vector<1x8x32xbf16> to vector<8x32xbf16>
    %cst_88 = arith.constant dense<0.000000e+00> : vector<16x32xf32>
    %315 = tpu.matmul %312, %314, %cst_88 {dimension_numbers = #tpu.dot_dimension_numbers<[1], [0], [0], [1], [0, 0, 1, 1], [], []>} : vector<16x8xbf16>, vector<8x32xbf16>, vector<16x32xf32> -> vector<16x32xf32>
    %316 = arith.addf %309, %315 : vector<16x32xf32>
    %c0_89 = arith.constant 0 : index
    %c192 = arith.constant 192 : index
    %317 = vector.load %arg4[%c0_89, %c192] : memref<16x256xf32, #tpu.memory_space<vmem>>, vector<16x32xf32>
    tpu.vector_store %arg4[%c0_89, %c192], %316 {strides = array<i32>} : memref<16x256xf32, #tpu.memory_space<vmem>>, vector<16x32xf32>,
    %318 = vector.extract_strided_slice %0 {offsets = [0, 56], sizes = [16, 8], strides = [1, 1]} : vector<16x128xf32> to vector<16x8xf32>
    %319 = vector.extract_strided_slice %0 {offsets = [0, 120], sizes = [16, 8], strides = [1, 1]} : vector<16x128xf32> to vector<16x8xf32>
    %cst_90 = arith.constant dense<0.000000e+00> : vector<16xf32>
    %320 = vector.multi_reduction <add>, %318, %cst_90 [1] : vector<16x8xf32> to vector<16xf32>
    %321 = vector.shape_cast %320 : vector<16xf32> to vector<16x1xf32>
    %cst_91 = arith.constant 0.000000e+00 : f32
    %322 = vector.broadcast %cst_91 : f32 to vector<16x1xf32>
    %323 = arith.addf %322, %321 : vector<16x1xf32>
    %cst_92 = arith.constant dense<0.000000e+00> : vector<16xf32>
    %324 = vector.multi_reduction <add>, %319, %cst_92 [1] : vector<16x8xf32> to vector<16xf32>
    %325 = vector.shape_cast %324 : vector<16xf32> to vector<16x1xf32>
    %326 = arith.addf %323, %325 : vector<16x1xf32>
    %cst_93 = arith.constant 6.250000e-02 : f32
    %327 = vector.broadcast %cst_93 : f32 to vector<16x1xf32>
    %328 = arith.mulf %326, %327 : vector<16x1xf32>
    %329 = vector.broadcast %328 : vector<16x1xf32> to vector<16x8xf32>
    %330 = arith.subf %318, %329 : vector<16x8xf32>
    %331 = vector.broadcast %328 : vector<16x1xf32> to vector<16x8xf32>
    %332 = arith.subf %319, %331 : vector<16x8xf32>
    %333 = arith.mulf %330, %330 : vector<16x8xf32>
    %cst_94 = arith.constant dense<0.000000e+00> : vector<16xf32>
    %334 = vector.multi_reduction <add>, %333, %cst_94 [1] : vector<16x8xf32> to vector<16xf32>
    %335 = vector.shape_cast %334 : vector<16xf32> to vector<16x1xf32>
    %cst_95 = arith.constant 0.000000e+00 : f32
    %336 = vector.broadcast %cst_95 : f32 to vector<16x1xf32>
    %337 = arith.addf %336, %335 : vector<16x1xf32>
    %338 = arith.mulf %332, %332 : vector<16x8xf32>
    %cst_96 = arith.constant dense<0.000000e+00> : vector<16xf32>
    %339 = vector.multi_reduction <add>, %338, %cst_96 [1] : vector<16x8xf32> to vector<16xf32>
    %340 = vector.shape_cast %339 : vector<16xf32> to vector<16x1xf32>
    %341 = arith.addf %337, %340 : vector<16x1xf32>
    %cst_97 = arith.constant 6.250000e-02 : f32
    %342 = vector.broadcast %cst_97 : f32 to vector<16x1xf32>
    %343 = arith.mulf %341, %342 : vector<16x1xf32>
    %cst_98 = arith.constant 9.99999974E-6 : f32
    %344 = vector.broadcast %cst_98 : f32 to vector<16x1xf32>
    %345 = arith.addf %343, %344 : vector<16x1xf32>
    %346 = math.rsqrt %345 : vector<16x1xf32>
    %347 = vector.broadcast %346 : vector<16x1xf32> to vector<16x8xf32>
    %348 = arith.mulf %330, %347 : vector<16x8xf32>
    %349 = arith.truncf %348 : vector<16x8xf32> to vector<16x8xbf16>
    %350 = vector.extract_strided_slice %1 {offsets = [0, 0, 0], sizes = [1, 8, 32], strides = [1, 1, 1]} : vector<2x8x32xbf16> to vector<1x8x32xbf16>
    %351 = vector.shape_cast %350 : vector<1x8x32xbf16> to vector<8x32xbf16>
    %cst_99 = arith.constant dense<0.000000e+00> : vector<16x32xf32>
    %352 = tpu.matmul %349, %351, %cst_99 {dimension_numbers = #tpu.dot_dimension_numbers<[1], [0], [0], [1], [0, 0, 1, 1], [], []>} : vector<16x8xbf16>, vector<8x32xbf16>, vector<16x32xf32> -> vector<16x32xf32>
    %353 = vector.broadcast %2 : vector<1x32xf32> to vector<16x32xf32>
    %354 = arith.addf %353, %352 : vector<16x32xf32>
    %355 = vector.broadcast %346 : vector<16x1xf32> to vector<16x8xf32>
    %356 = arith.mulf %332, %355 : vector<16x8xf32>
    %357 = arith.truncf %356 : vector<16x8xf32> to vector<16x8xbf16>
    %358 = vector.extract_strided_slice %1 {offsets = [1, 0, 0], sizes = [1, 8, 32], strides = [1, 1, 1]} : vector<2x8x32xbf16> to vector<1x8x32xbf16>
    %359 = vector.shape_cast %358 : vector<1x8x32xbf16> to vector<8x32xbf16>
    %cst_100 = arith.constant dense<0.000000e+00> : vector<16x32xf32>
    %360 = tpu.matmul %357, %359, %cst_100 {dimension_numbers = #tpu.dot_dimension_numbers<[1], [0], [0], [1], [0, 0, 1, 1], [], []>} : vector<16x8xbf16>, vector<8x32xbf16>, vector<16x32xf32> -> vector<16x32xf32>
    %361 = arith.addf %354, %360 : vector<16x32xf32>
    %c0_101 = arith.constant 0 : index
    %c224 = arith.constant 224 : index
    %362 = vector.load %arg4[%c0_101, %c224] : memref<16x256xf32, #tpu.memory_space<vmem>>, vector<16x32xf32>
    tpu.vector_store %arg4[%c0_101, %c224], %361 {strides = array<i32>} : memref<16x256xf32, #tpu.memory_space<vmem>>, vector<16x32xf32>,
    return
  }
  func.func @transform_0(%arg0: i32) -> (i32, i32) {
    %c0_i32 = arith.constant 0 : i32
    %c0_i32_0 = arith.constant 0 : i32
    return %arg0, %c0_i32 : i32, i32
  }
  func.func @transform_1(%arg0: i32) -> (i32, i32, i32) {
    %c0_i32 = arith.constant 0 : i32
    %c0_i32_0 = arith.constant 0 : i32
    %c0_i32_1 = arith.constant 0 : i32
    %c0_i32_2 = arith.constant 0 : i32
    return %c0_i32, %c0_i32_0, %c0_i32_1 : i32, i32, i32
  }
  func.func @transform_2(%arg0: i32) -> (i32, i32) {
    %c0_i32 = arith.constant 0 : i32
    %c0_i32_0 = arith.constant 0 : i32
    %c0_i32_1 = arith.constant 0 : i32
    return %c0_i32, %c0_i32_0 : i32, i32
  }
  func.func @transform_3(%arg0: i32) -> (i32, i32) {
    %c0_i32 = arith.constant 0 : i32
    %c0_i32_0 = arith.constant 0 : i32
    return %arg0, %c0_i32 : i32, i32
  }
}

</mosaic_0001>

<bundles_post_ra>
// kernel: patch_merging_apply.1
= control target key start
LH: loop header
LB: loop body
LE: loop exit
PB: predicated region body
PF: predicated region fallthrough
CT: control target
= control target key end

     0   :  { %vm20_vm0 = vcmask 64512   ;;  %s1227_s14 = smov 64   ;;  %s1228_s15 = smov 120   ;;  %vm105_vm1 = vcmask 1043456   ;;  %s1702_s0 = inlined_call_operand.vmem [shape: f32[16,128], index: 0, kind: input, shape index: {}]   ;;  %s1703_s1 = inlined_call_operand.vmem [shape: bf16[2,8,32], index: 1, kind: input, shape index: {}]   ;;  %s1704_s2 = inlined_call_operand.vmem [shape: f32[1,32], index: 2, kind: input, shape index: {}]   ;;  %s1705_s3 = inlined_call_operand.vmem [shape: f32[16,256], index: 3, kind: output, shape index: {}]  }
   0x1   :  { %v1265_v0 = vld [vmem:[%s1702_s0] sm:$0xff]  ;;  %v1276_v2 = vld [vmem:[%s1702_s0 + $0x8] sm:$0xff]  ;;  %s1229_s18 = smov 56   ;;  %s1230_s19 = smov 112  }
   0x2   :  { %31 = vrot.lane.b32.xlu1 %v1265_v0, %s1227_s14  ;;  %v21_v1 = vsel %vm20_vm0, %v1265_v0, 0.0  ;;  %156 = vrot.lane.b32.xlu2 %v1265_v0, %s1228_s15  ;;  %v24_v3 = vsel %vm20_vm0, %v1276_v2, 0.0  ;;  %s1231_s0 = smov 48   ;;  %s1232_s20 = smov 104  }
   0x3   :  { %22 = vadd.xlane.f32.xlu0 %v21_v1  ;;  %s1233_s21 = smov 40   ;;  %s1234_s29 = smov 96  }
   0x4   :  { %s1235_s4 = smov 32   ;;  %s1236_s5 = smov 88  }
   0x5   :  { %s1237_s6 = smov 72   ;;  %s1238_s7 = smov 24  }
   0x6   :  { %s1239_s8 = smov 8   ;;  %s1240_s9 = smov 80  }
   0x7   :  { %s1241_s10 = smov 16  }
   0xa   :  { %33 = vrot.lane.b32.xlu1 %v1276_v2, %s1227_s14  ;;  %172 = vrot.lane.b32.xlu2 %v1276_v2, %s1229_s18 }
   0xb   :  { %25 = vadd.xlane.f32.xlu0 %v24_v3 }
  0x12   :  { %158 = vrot.lane.b32.xlu1 %v1276_v2, %s1228_s15 }
  0x1a   :  { %301 = vrot.lane.b32.xlu1 %v1265_v0, %s1230_s19 }
  0x1f   :  { %170 = vrot.lane.b32.xlu0 %v1265_v0, %s1229_s18 }
  0x22   :  { %303 = vrot.lane.b32.xlu1 %v1276_v2, %s1230_s19 }
  0x5c   :  { %v157_v4 = vpop.permute.xlu2 %156 }
  0x5d   :  { %v162_v5 = vsel %vm20_vm0, %v157_v4, 0.0 }
  0x5e   :  { %163 = vadd.xlane.f32.xlu0 %v162_v5 }
  0x64   :  { %v173_v7 = vpop.permute.xlu2 %172 }
  0x65   :  { %v179_v9 = vsel %vm20_vm0, %v173_v7, 0.0 }
  0x66   :  { %180 = vadd.xlane.f32.xlu0 %v179_v9 }
  0x74   :  { %v32_v6 = vpop.permute.xlu1 %31 }
  0x75   :  { %v37_v8 = vsel %vm20_vm0, %v32_v6, 0.0 }
  0x76   :  { %38 = vadd.xlane.f32.xlu2 %v37_v8  ;;  %v23_v12 = vpop.xlane.xlu0 %22 }
  0x7c   :  { %v34_v10 = vpop.permute.xlu1 %33 }
  0x7d   :  { %v40_v11 = vsel %vm20_vm0, %v34_v10, 0.0 }
  0x7e   :  { %41 = vadd.xlane.f32.xlu2 %v40_v11  ;;  %v26_v15 = vpop.xlane.xlu0 %25 }
  0x84   :  { %v159_v13 = vpop.permute.xlu1 %158 }
  0x85   :  { %v165_v14 = vsel %vm20_vm0, %v159_v13, 0.0 }
  0x86   :  { %166 = vadd.xlane.f32.xlu1 %v165_v14 }
  0x8c   :  { %v302_v18 = vpop.permute.xlu1 %301 }
  0x8d   :  { %v307_v21 = vsel %vm20_vm0, %v302_v18, 0.0 }
  0x8e   :  { %308 = vadd.xlane.f32.xlu0 %v307_v21 }
  0x91   :  { %v171_v16 = vpop.permute.xlu0 %170 }
  0x92   :  { %v176_v17 = vsel %vm20_vm0, %v171_v16, 0.0 }
  0x93   :  { %177 = vadd.xlane.f32.xlu2 %v176_v17 }
  0x94   :  { %v304_v19 = vpop.permute.xlu1 %303 }
  0x95   :  { %v310_v20 = vsel %vm20_vm0, %v304_v19, 0.0 }
  0x96   :  { %311 = vadd.xlane.f32.xlu1 %v310_v20 }
  0xab   :  { %315 = vrot.lane.b32.xlu2 %v1265_v0, %s1231_s0 }
  0xaf   :  { %448 = vrot.lane.b32.xlu1 %v1276_v2, %s1232_s20 }
  0xb3   :  { %317 = vrot.lane.b32.xlu2 %v1276_v2, %s1231_s0 }
  0xd1   :  { %v164_v24 = vpop.xlane.xlu0 %163 }
  0xd9   :  { %v181_v36 = vpop.xlane.xlu0 %180 }
  0xe9   :  { %v39_v22 = vpop.xlane.xlu2 %38 }
  0xea   :  { %v43_v34 = vadd.f32 %v39_v22, %v23_v12 }
  0xec   :  { %v45_v37 = vmul.f32 0.0625, %v43_v34 }
  0xee   :  { %v1315_v39 = vsub.f32 %v1265_v0, %v45_v37 }
  0xf0   :  { %v49_v42 = vmul.f32 %v1315_v39, %v1315_v39 }
  0xf1   :  { %v42_v23 = vpop.xlane.xlu2 %41 }
  0xf2   :  { %v44_v41 = vadd.f32 %v42_v23, %v26_v15  ;;  %v51_v3 = vsel %vm20_vm0, %v49_v42, 0.0 }
  0xf4   :  { %v46_v44 = vmul.f32 0.0625, %v44_v41 }
  0xf6   :  { %v1328_v46 = vsub.f32 %v1276_v2, %v46_v44 }
  0xf8   :  { %v50_v47 = vmul.f32 %v1328_v46, %v1328_v46 }
  0xf9   :  { %v167_v35 = vpop.xlane.xlu1 %166 }
  0xfa   :  { %v183_v38 = vadd.f32 %v181_v36, %v167_v35  ;;  %v54_v1 = vsel %vm20_vm0, %v50_v47, 0.0 }
  0xfc   :  { %v185_v40 = vmul.f32 0.0625, %v183_v38 }
  0xfe   :  { %v1320_v43 = vsub.f32 %v1276_v2, %v185_v40 }
 0x100   :  { %v189_v45 = vmul.f32 %v1320_v43, %v1320_v43 }
 0x101   :  { %v309_v48 = vpop.xlane.xlu0 %308 }
 0x106   :  { %v178_v25 = vpop.xlane.xlu2 %177 }
 0x107   :  { %v182_v26 = vadd.f32 %v178_v25, %v164_v24  ;;  %v17_v24 = vld [vmem:[%s1703_s1] sm:$0xf] }
 0x109   :  { %v184_v27 = vmul.f32 0.0625, %v182_v26  ;;  %v312_v54 = vpop.xlane.xlu1 %311  ;;  %v1368_v26 = vsel %vm105_vm1, %v17_v24, 0 }
 0x10a   :  { %116 = vmatpush.bf16.msra.mxu0 %v1368_v26  ;;  %260 = vmatpush.bf16.msra.mxu2 %v1368_v26 }
 0x10b   :  { %v1307_v28 = vsub.f32 %v1265_v0, %v184_v27 }
 0x10d   :  { %v188_v29 = vmul.f32 %v1307_v28, %v1307_v28 }
 0x10e   :  { %v316_v30 = vpop.permute.xlu2 %315  ;;  %405 = vmatpush.bf16.msrb.mxu0 %v1368_v26  ;;  %550 = vmatpush.bf16.msrb.mxu2 %v1368_v26 }
 0x10f   :  { %192 = vrot.lane.b32.xlu1 %v188_v29, %s1228_s15  ;;  %v321_v31 = vsel %vm20_vm0, %v316_v30, 0.0 }
 0x110   :  { %322 = vadd.xlane.f32.xlu2 %v321_v31 }
 0x116   :  { %v318_v32 = vpop.permute.xlu2 %317 }
 0x117   :  { %v324_v33 = vsel %vm20_vm0, %v318_v32, 0.0 }
 0x118   :  { %325 = vadd.xlane.f32.xlu0 %v324_v33 }
 0x121   :  { %v449_v4 = vpop.permute.xlu1 %448 }
 0x122   :  { %v455_v11 = vsel %vm20_vm0, %v449_v4, 0.0 }
 0x128   :  { %61 = vrot.lane.b32.xlu2 %v49_v42, %s1227_s14 }
 0x12c   :  { %446 = vrot.lane.b32.xlu0 %v1265_v0, %s1232_s20 }
 0x130   :  { %194 = vrot.lane.b32.xlu2 %v189_v45, %s1228_s15 }
 0x134   :  { %63 = vrot.lane.b32.xlu0 %v50_v47, %s1227_s14 }
 0x138   :  { %208 = vrot.lane.b32.xlu2 %v189_v45, %s1229_s18 }
 0x13c   :  { %206 = vrot.lane.b32.xlu0 %v188_v29, %s1229_s18 }
 0x181   :  { %v193_v10 = vpop.permute.xlu1 %192 }
 0x182   :  { %v198_v12 = vsel %vm20_vm0, %v193_v10, 0.0 }
 0x183   :  { %v323_v49 = vpop.xlane.xlu2 %322 }
 0x184   :  { %v327_v50 = vadd.f32 %v323_v49, %v309_v48 }
 0x186   :  { %v329_v51 = vmul.f32 0.0625, %v327_v50 }
 0x188   :  { %v1337_v52 = vsub.f32 %v1265_v0, %v329_v51 }
 0x18a   :  { %v333_v53 = vmul.f32 %v1337_v52, %v1337_v52 }
 0x18b   :  { %v326_v55 = vpop.xlane.xlu0 %325  ;;  %v62_v60 = vpop.permute.xlu2 %61 }
 0x18c   :  { %v328_v56 = vadd.f32 %v326_v55, %v312_v54  ;;  %337 = vrot.lane.b32.xlu1 %v333_v53, %s1230_s19  ;;  %v67_v63 = vsel %vm20_vm0, %v62_v60, 0.0 }
 0x18e   :  { %v330_v57 = vmul.f32 0.0625, %v328_v56 }
 0x190   :  { %v1343_v58 = vsub.f32 %v1276_v2, %v330_v57 }
 0x192   :  { %v334_v59 = vmul.f32 %v1343_v58, %v1343_v58 }
 0x193   :  { %v195_v61 = vpop.permute.xlu2 %194 }
 0x194   :  { %351 = vrot.lane.b32.xlu1 %v333_v53, %s1231_s0  ;;  %353 = vrot.lane.b32.xlu2 %v334_v59, %s1231_s0  ;;  %v201_v8 = vsel %vm20_vm0, %v195_v61, 0.0 }
 0x195   :  { %339 = vrot.lane.b32.xlu0 %v334_v59, %s1230_s19 }
 0x19b   :  { %v209_v5 = vpop.permute.xlu2 %208 }
 0x19c   :  { %v215_v7 = vsel %vm20_vm0, %v209_v5, 0.0 }
 0x19e   :  { %v447_v62 = vpop.permute.xlu0 %446 }
 0x19f   :  { %v452_v32 = vsel %vm20_vm0, %v447_v62, 0.0 }
 0x1a6   :  { %v64_v6 = vpop.permute.xlu0 %63 }
 0x1a7   :  { %v70_v9 = vsel %vm20_vm0, %v64_v6, 0.0 }
 0x1ae   :  { %v207_v13 = vpop.permute.xlu0 %206 }
 0x1af   :  { %v212_v14 = vsel %vm20_vm0, %v207_v13, 0.0 }
 0x1bd   :  { %68 = vadd.xlane.f32.xlu2 %v67_v63 }
 0x1be   :  { %55 = vadd.xlane.f32.xlu1 %v54_v1 }
 0x1bf   :  { %52 = vadd.xlane.f32.xlu0 %v51_v3 }
 0x1c5   :  { %216 = vadd.xlane.f32.xlu2 %v215_v7 }
 0x1c6   :  { %202 = vadd.xlane.f32.xlu1 %v201_v8 }
 0x1c7   :  { %71 = vadd.xlane.f32.xlu0 %v70_v9 }
 0x1ce   :  { %456 = vadd.xlane.f32.xlu1 %v455_v11 }
 0x1cf   :  { %199 = vadd.xlane.f32.xlu0 %v198_v12 }
 0x1d7   :  { %213 = vadd.xlane.f32.xlu0 %v212_v14 }
 0x1ee   :  { %v354_v21 = vpop.permute.xlu2 %353 }
 0x1ef   :  { %v360_v38 = vsel %vm20_vm0, %v354_v21, 0.0 }
 0x1fe   :  { %v338_v15 = vpop.permute.xlu1 %337 }
 0x1ff   :  { %v343_v16 = vsel %vm20_vm0, %v338_v15, 0.0 }
 0x200   :  { %344 = vadd.xlane.f32.xlu2 %v343_v16 }
 0x206   :  { %v352_v17 = vpop.permute.xlu1 %351 }
 0x207   :  { %v357_v18 = vsel %vm20_vm0, %v352_v17, 0.0  ;;  %v340_v19 = vpop.permute.xlu0 %339 }
 0x208   :  { %358 = vadd.xlane.f32.xlu1 %v357_v18  ;;  %v346_v20 = vsel %vm20_vm0, %v340_v19, 0.0 }
 0x209   :  { %347 = vadd.xlane.f32.xlu0 %v346_v20 }
 0x211   :  { %453 = vadd.xlane.f32.xlu0 %v452_v32 }
 0x218   :  { %460 = vrot.lane.b32.xlu2 %v1265_v0, %s1233_s21 }
 0x230   :  { %v69_v22 = vpop.xlane.xlu2 %68 }
 0x231   :  { %v56_v30 = vpop.xlane.xlu1 %55 }
 0x232   :  { %v53_v23 = vpop.xlane.xlu0 %52 }
 0x233   :  { %v73_v25 = vadd.f32 %v69_v22, %v53_v23 }
 0x235   :  { %v75_v27 = vmul.f32 0.0625, %v73_v25 }
 0x237   :  { %v77_v29 = vadd.f32 1e-05, %v75_v27 }
 0x238   :  { %v217_v59 = vpop.xlane.xlu2 %216 }
 0x239   :  { %1195 = vrsqrt.f32 %v77_v29  ;;  %vm85_vm3 = vweird.f32 %v77_v29  ;;  %v203_v63 = vpop.xlane.xlu1 %202 }
 0x23a   :  { %v72_v31 = vpop.xlane.xlu0 %71 }
 0x23b   :  { %v74_v33 = vadd.f32 %v72_v31, %v56_v30 }
 0x23d   :  { %v76_v34 = vmul.f32 0.0625, %v74_v33 }
 0x23f   :  { %v1196_v35 = vpop.eup %1195  ;;  %v78_v36 = vadd.f32 1e-05, %v76_v34  ;;  %v219_v34 = vadd.f32 %v217_v59, %v203_v63 }
 0x240   :  { %v80_v37 = vmul.f32 %v1196_v35, %v77_v29  ;;  %vm86_vm2 = vweird.f32 %v1196_v35 }
 0x241   :  { %1197 = vrsqrt.f32 %v78_v36  ;;  %361 = vadd.xlane.f32.xlu2 %v360_v38  ;;  %vm87_vm5 = vmor %vm85_vm3, %vm86_vm2  ;;  %vm95_vm6 = vweird.f32 %v78_v36 }
 0x242   :  { %v81_v40 = vmul.f32 %v1196_v35, %v80_v37  ;;  %v200_v3 = vpop.xlane.xlu0 %199 }
 0x244   :  { %v82_v41 = vmul.f32 0.5, %v81_v40 }
 0x246   :  { %v83_v44 = vsub.f32 1.5, %v82_v41 }
 0x247   :  { %v1198_v42 = vpop.eup %1197 }
 0x248   :  { %v90_v45 = vmul.f32 %v1198_v42, %v78_v36  ;;  %v84_v48 = vmul.f32 %v1196_v35, %v83_v44  ;;  %vm96_vm4 = vweird.f32 %v1198_v42  ;;  %v221_v36 = vmul.f32 0.0625, %v219_v34 }
 0x249   :  { %vm97_vm7 = vmor %vm95_vm6, %vm96_vm4 }
 0x24a   :  { %v91_v47 = vmul.f32 %v1198_v42, %v90_v45  ;;  %v88_v53 = vsel %vm87_vm5, %v1196_v35, %v84_v48  ;;  %v214_v6 = vpop.xlane.xlu0 %213  ;;  %v223_v38 = vadd.f32 1e-05, %v221_v36 }
 0x24b   :  { %v99_v55 = vmul.f32 %v88_v53, %v1315_v39  ;;  %v1386_v39 = vpop.xlane.xlu1 %456  ;;  %v218_v33 = vadd.f32 %v214_v6, %v200_v3 }
 0x24c   :  { %v92_v49 = vmul.f32 0.5, %v91_v47  ;;  %vm240_vm4 = vweird.f32 %v223_v38 }
 0x24d   :  { %v220_v35 = vmul.f32 0.0625, %v218_v33 }
 0x24e   :  { %v93_v50 = vsub.f32 1.5, %v92_v49 }
 0x24f   :  { %v222_v37 = vadd.f32 1e-05, %v220_v35 }
 0x250   :  { %v94_v51 = vmul.f32 %v1198_v42, %v93_v50 }
 0x251   :  { %vm230_vm2 = vweird.f32 %v222_v37 }
 0x252   :  { %v98_v54 = vsel %vm97_vm7, %v1198_v42, %v94_v51 }
 0x253   :  { %v100_v56 = vmul.f32 %v98_v54, %v1328_v46 }
 0x255   :  { %v1378_v57 = vpack.c.bf16 %v100_v56, %v99_v55 }
 0x257   :  { %1163 = vmatmul.msk.bf16.vlgmr.msra.gmra.mxu0 %vm20_vm0, %v1378_v57 }
 0x258   :  { %695 = vmatpush.bf16.msra.mxu0 %v1368_v26 }
 0x259   :  { %462 = vrot.lane.b32.xlu2 %v1276_v2, %s1233_s21 }
 0x273   :  { %v345_v60 = vpop.xlane.xlu2 %344 }
 0x27b   :  { %v461_v61 = vpop.permute.xlu2 %460  ;;  %v359_v46 = vpop.xlane.xlu1 %358 }
 0x27c   :  { %v466_v62 = vsel %vm20_vm0, %v461_v61, 0.0  ;;  %v363_v1 = vadd.f32 %v359_v46, %v345_v60  ;;  %v348_v8 = vpop.xlane.xlu0 %347 }
 0x27e   :  { %v365_v4 = vmul.f32 0.0625, %v363_v1 }
 0x280   :  { %v367_v5 = vadd.f32 1e-05, %v365_v4 }
 0x282   :  { %467 = vadd.xlane.f32.xlu2 %v466_v62  ;;  %1199 = vrsqrt.f32 %v367_v5  ;;  %vm375_vm9 = vweird.f32 %v367_v5 }
 0x284   :  { %v454_v40 = vpop.xlane.xlu0 %453 }
 0x288   :  { %v1200_v7 = vpop.eup %1199 }
 0x289   :  { %v370_v11 = vmul.f32 %v1200_v7, %v367_v5  ;;  %vm376_vm8 = vweird.f32 %v1200_v7 }
 0x28a   :  { %vm377_vm11 = vmor %vm375_vm9, %vm376_vm8 }
 0x28b   :  { %v371_v14 = vmul.f32 %v1200_v7, %v370_v11 }
 0x28d   :  { %v372_v17 = vmul.f32 0.5, %v371_v14 }
 0x28f   :  { %v373_v19 = vsub.f32 1.5, %v372_v17 }
 0x291   :  { %v374_v22 = vmul.f32 %v1200_v7, %v373_v19 }
 0x293   :  { %v378_v27 = vsel %vm377_vm11, %v1200_v7, %v374_v22 }
 0x294   :  { %v389_v30 = vmul.f32 %v378_v27, %v1337_v52 }
 0x2b4   :  { %v362_v9 = vpop.xlane.xlu2 %361 }
 0x2b5   :  { %v364_v10 = vadd.f32 %v362_v9, %v348_v8 }
 0x2b7   :  { %v366_v12 = vmul.f32 0.0625, %v364_v10 }
 0x2b9   :  { %v368_v13 = vadd.f32 1e-05, %v366_v12 }
 0x2bb   :  { %1201 = vrsqrt.f32 %v368_v13  ;;  %vm385_vm12 = vweird.f32 %v368_v13 }
 0x2bc   :  { %v463_v15 = vpop.permute.xlu2 %462  ;;  %1203 = vrsqrt.f32 %v222_v37 }
 0x2bd   :  { %v469_v16 = vsel %vm20_vm0, %v463_v15, 0.0  ;;  %1205 = vrsqrt.f32 %v223_v38 }
 0x2be   :  { %470 = vadd.xlane.f32.xlu0 %v469_v16 }
 0x2c1   :  { %v1202_v18 = vpop.eup %1201 }
 0x2c2   :  { %v380_v20 = vmul.f32 %v1202_v18, %v368_v13  ;;  %vm386_vm10 = vweird.f32 %v1202_v18  ;;  %v1204_v42 = vpop.eup %1203 }
 0x2c3   :  { %vm387_vm13 = vmor %vm385_vm12, %vm386_vm10  ;;  %v1206_v45 = vpop.eup %1205  ;;  %v225_v48 = vmul.f32 %v1204_v42, %v222_v37  ;;  %vm231_vm14 = vweird.f32 %v1204_v42  ;;  %vm298_vm12 = vcmask 523520  }
 0x2c4   :  { %v381_v21 = vmul.f32 %v1202_v18, %v380_v20  ;;  %vm241_vm15 = vweird.f32 %v1206_v45  ;;  %vm232_vm3 = vmor %vm230_vm2, %vm231_vm14  ;;  %v1443_v20 = vld [vmem:[%s1704_s2] ss:$0 sm:$0xff]  ;;  %vm588_vm14 = vcmask 1048320  }
 0x2c5   :  { %v226_v50 = vmul.f32 %v1204_v42, %v225_v48  ;;  %vm242_vm5 = vmor %vm240_vm4, %vm241_vm15 }
 0x2c6   :  { %v382_v23 = vmul.f32 0.5, %v381_v21 }
 0x2c7   :  { %v227_v53 = vmul.f32 0.5, %v226_v50 }
 0x2c8   :  { %v383_v24 = vsub.f32 1.5, %v382_v23 }
 0x2c9   :  { %v228_v55 = vsub.f32 1.5, %v227_v53 }
 0x2ca   :  { %v384_v25 = vmul.f32 %v1202_v18, %v383_v24 }
 0x2cb   :  { %v229_v59 = vmul.f32 %v1204_v42, %v228_v55 }
 0x2cc   :  { %v388_v29 = vsel %vm387_vm13, %v1202_v18, %v384_v25  ;;  %vm443_vm13 = vcmask 785920  }
 0x2cd   :  { %v390_v31 = vmul.f32 %v388_v29, %v1343_v58  ;;  %v235_v58 = vmul.f32 %v1206_v45, %v223_v38  ;;  %v233_v61 = vsel %vm232_vm3, %v1204_v42, %v229_v59 }
 0x2ce   :  { %v244_v63 = vmul.f32 %v233_v61, %v1307_v28 }
 0x2cf   :  { %v1391_v32 = vpack.c.bf16 %v390_v31, %v389_v30  ;;  %v236_v51 = vmul.f32 %v1206_v45, %v235_v58 }
 0x2d1   :  { %v237_v54 = vmul.f32 0.5, %v236_v51 }
 0x2d3   :  { %v238_v56 = vsub.f32 1.5, %v237_v54 }
 0x2d4   :  { %v118_v19 = vpop.f32.mrf.mxu0 }
 0x2d5   :  { %v239_v60 = vmul.f32 %v1206_v45, %v238_v56  ;;  %v126_v21 = vadd.f32 %v1443_v20, %v118_v19 }
 0x2d7   :  { %v243_v62 = vsel %vm242_vm5, %v1206_v45, %v239_v60 }
 0x2d8   :  { %v245_v46 = vmul.f32 %v243_v62, %v1320_v43  ;;  %v18_v43 = vld [vmem:[%s1703_s1 + $0x4] sm:$0xf] }
 0x2da   :  { %v246_v1 = vpack.c.bf16 %v245_v46, %v244_v63 }
 0x2dc   :  { %v120_v24 = vpop.f32.mrf.mxu0 }
 0x2dd   :  { %v127_v25 = vadd.f32 %v1443_v20, %v120_v24 }
 0x2f5   :  { %v468_v41 = vpop.xlane.xlu2 %467 }
 0x2f6   :  { %v472_v44 = vadd.f32 %v468_v41, %v454_v40 }
 0x2f8   :  { %v474_v47 = vmul.f32 0.0625, %v472_v44 }
 0x2fa   :  { %v1394_v52 = vsub.f32 %v1265_v0, %v474_v47 }
 0x2fc   :  { %v478_v49 = vmul.f32 %v1394_v52, %v1394_v52 }
 0x2fe   :  { %482 = vrot.lane.b32.xlu1 %v478_v49, %s1232_s20 }
 0x306   :  { %496 = vrot.lane.b32.xlu1 %v478_v49, %s1233_s21 }
 0x30e   :  { %129 = vrot.lane.b32.xlu1 %v1378_v57, %s1227_s14  ;;  %v1419_v57 = vsel %vm105_vm1, %v18_v43, 0  ;;  %vm153_vm1 = vcmask 261120  }
 0x30f   :  { %144 = vmatpush.bf16.msra.mxu1 %v1419_v57  ;;  %281 = vmatpush.bf16.msra.mxu3 %v1419_v57 }
 0x313   :  { %426 = vmatpush.bf16.msrb.mxu1 %v1419_v57  ;;  %571 = vmatpush.bf16.msrb.mxu3 %v1419_v57 }
 0x316   :  { %248 = vrot.lane.b32.xlu1 %v246_v1, %s1228_s15 }
 0x31e   :  { %269 = vrot.lane.b32.xlu1 %v246_v1, %s1229_s18 }
 0x326   :  { %414 = vrot.lane.b32.xlu1 %v1391_v32, %s1231_s0 }
 0x331   :  { %v471_v3 = vpop.xlane.xlu0 %470 }
 0x332   :  { %v473_v4 = vadd.f32 %v471_v3, %v1386_v39 }
 0x334   :  { %v475_v5 = vmul.f32 0.0625, %v473_v4 }
 0x336   :  { %v1410_v6 = vsub.f32 %v1276_v2, %v475_v5 }
 0x338   :  { %v479_v28 = vmul.f32 %v1410_v6, %v1410_v6 }
 0x33a   :  { %484 = vrot.lane.b32.xlu0 %v479_v28, %s1232_s20 }
 0x370   :  { %v483_v39 = vpop.permute.xlu1 %482 }
 0x371   :  { %v488_v7 = vsel %vm20_vm0, %v483_v39, 0.0 }
 0x372   :  { %489 = vadd.xlane.f32.xlu2 %v488_v7 }
 0x378   :  { %v497_v8 = vpop.permute.xlu1 %496 }
 0x379   :  { %v502_v9 = vsel %vm20_vm0, %v497_v8, 0.0 }
 0x37a   :  { %503 = vadd.xlane.f32.xlu1 %v502_v9 }
 0x380   :  { %v130_v10 = vpop.permute.xlu1 %129 }
 0x381   :  { %1164 = vmatmul.msk.bf16.vlgmr.msra.gmra.mxu1 %vm20_vm0, %v130_v10 }
 0x382   :  { %716 = vmatpush.bf16.msra.mxu1 %v1419_v57 }
 0x388   :  { %v249_v11 = vpop.permute.xlu1 %248 }
 0x389   :  { %1165 = vmatmul.msk.bf16.vlgmr.msra.gmra.mxu2 %vm20_vm0, %v249_v11 }
 0x38a   :  { %498 = vrot.lane.b32.xlu2 %v479_v28, %s1233_s21  ;;  %831 = vmatpush.bf16.msra.mxu2 %v1368_v26 }
 0x390   :  { %v270_v12 = vpop.permute.xlu1 %269 }
 0x391   :  { %1166 = vmatmul.msk.bf16.vlgmr.msra.gmra.mxu3 %vm20_vm0, %v270_v12 }
 0x392   :  { %852 = vmatpush.bf16.msra.mxu3 %v1419_v57 }
 0x398   :  { %v415_v13 = vpop.permute.xlu1 %414 }
 0x399   :  { %1168 = vmatmul.msk.bf16.vlgmr.msrb.gmra.mxu1 %vm20_vm0, %v415_v13 }
 0x39a   :  { %996 = vmatpush.bf16.msrb.mxu1 %v1419_v57 }
 0x3ac   :  { %v485_v14 = vpop.permute.xlu0 %484 }
 0x3ad   :  { %v491_v15 = vsel %vm20_vm0, %v485_v14, 0.0 }
 0x3ae   :  { %492 = vadd.xlane.f32.xlu0 %v491_v15 }
 0x3c2   :  { %393 = vrot.lane.b32.xlu0 %v1391_v32, %s1230_s19 }
 0x3e5   :  { %v490_v16 = vpop.xlane.xlu2 %489 }
 0x3ed   :  { %v499_v17 = vpop.permute.xlu2 %498  ;;  %v504_v32 = vpop.xlane.xlu1 %503 }
 0x3ee   :  { %v505_v18 = vsel %vm20_vm0, %v499_v17, 0.0  ;;  %v508_v33 = vadd.f32 %v504_v32, %v490_v16 }
 0x3ef   :  { %506 = vadd.xlane.f32.xlu2 %v505_v18 }
 0x3f0   :  { %v510_v34 = vmul.f32 0.0625, %v508_v33 }
 0x3f2   :  { %v512_v35 = vadd.f32 1e-05, %v510_v34 }
 0x3f4   :  { %1207 = vrsqrt.f32 %v512_v35  ;;  %vm520_vm7 = vweird.f32 %v512_v35 }
 0x3fa   :  { %v1208_v36 = vpop.eup %1207 }
 0x3fb   :  { %v515_v40 = vmul.f32 %v1208_v36, %v512_v35  ;;  %vm521_vm6 = vweird.f32 %v1208_v36 }
 0x3fc   :  { %vm522_vm9 = vmor %vm520_vm7, %vm521_vm6 }
 0x3fd   :  { %v516_v44 = vmul.f32 %v1208_v36, %v515_v40 }
 0x3fe   :  { %v146_v22 = vpop.f32.mrf.mxu1 }
 0x3ff   :  { %v151_v23 = vadd.f32 %v146_v22, %v126_v21  ;;  %v517_v45 = vmul.f32 0.5, %v516_v44 }
 0x401   :  { %154 = vst.msk [vmem:[%s1705_s3] sm:$0xff] %vm153_vm1, %v151_v23  ;;  %v518_v48 = vsub.f32 1.5, %v517_v45 }
 0x403   :  { %v519_v50 = vmul.f32 %v1208_v36, %v518_v48 }
 0x405   :  { %v523_v55 = vsel %vm522_vm9, %v1208_v36, %v519_v50 }
 0x406   :  { %v148_v27 = vpop.f32.mrf.mxu1  ;;  %v534_v59 = vmul.f32 %v523_v55, %v1394_v52 }
 0x407   :  { %v152_v29 = vadd.f32 %v148_v27, %v127_v25  ;;  %591 = vrot.lane.b32.xlu2 %v1265_v0, %s1234_s29 }
 0x409   :  { %155 = vst.msk [vmem:[%s1705_s3 + $0x10] sm:$0xff] %vm153_vm1, %v152_v29 }
 0x40f   :  { %605 = vrot.lane.b32.xlu2 %v1265_v0, %s1235_s4 }
 0x417   :  { %607 = vrot.lane.b32.xlu2 %v1276_v2, %s1235_s4 }
 0x421   :  { %v493_v30 = vpop.xlane.xlu0 %492 }
 0x434   :  { %v394_v31 = vpop.permute.xlu0 %393 }
 0x435   :  { %1167 = vmatmul.msk.bf16.vlgmr.msrb.gmra.mxu0 %vm20_vm0, %v394_v31 }
 0x436   :  { %975 = vmatpush.bf16.msrb.mxu0 %v1368_v26 }
 0x462   :  { %v507_v37 = vpop.xlane.xlu2 %506 }
 0x463   :  { %v509_v38 = vadd.f32 %v507_v37, %v493_v30 }
 0x465   :  { %v511_v41 = vmul.f32 0.0625, %v509_v38 }
 0x467   :  { %v513_v42 = vadd.f32 1e-05, %v511_v41 }
 0x469   :  { %1209 = vrsqrt.f32 %v513_v42  ;;  %vm530_vm10 = vweird.f32 %v513_v42 }
 0x46a   :  { %v592_v62 = vpop.permute.xlu2 %591 }
 0x46b   :  { %v597_v46 = vsel %vm20_vm0, %v592_v62, 0.0 }
 0x46f   :  { %v1210_v47 = vpop.eup %1209 }
 0x470   :  { %v525_v58 = vmul.f32 %v1210_v47, %v513_v42  ;;  %vm531_vm8 = vweird.f32 %v1210_v47 }
 0x471   :  { %vm532_vm11 = vmor %vm530_vm10, %vm531_vm8 }
 0x472   :  { %v526_v49 = vmul.f32 %v1210_v47, %v525_v58  ;;  %v606_v63 = vpop.permute.xlu2 %605 }
 0x473   :  { %v611_v1 = vsel %vm20_vm0, %v606_v63, 0.0 }
 0x474   :  { %v527_v51 = vmul.f32 0.5, %v526_v49  ;;  %612 = vadd.xlane.f32.xlu2 %v611_v1 }
 0x476   :  { %v528_v53 = vsub.f32 1.5, %v527_v51 }
 0x478   :  { %v529_v54 = vmul.f32 %v1210_v47, %v528_v53 }
 0x47a   :  { %v533_v56 = vsel %vm532_vm11, %v1210_v47, %v529_v54  ;;  %v608_v43 = vpop.permute.xlu2 %607 }
 0x47b   :  { %v535_v60 = vmul.f32 %v533_v56, %v1410_v6  ;;  %v614_v21 = vsel %vm20_vm0, %v608_v43, 0.0 }
 0x47d   :  { %v536_v61 = vpack.c.bf16 %v535_v60, %v534_v59 }
 0x47f   :  { %559 = vrot.lane.b32.xlu1 %v536_v61, %s1233_s21  ;;  %538 = vrot.lane.b32.xlu0 %v536_v61, %s1232_s20 }
 0x487   :  { %593 = vrot.lane.b32.xlu1 %v1276_v2, %s1234_s29 }
 0x48c   :  { %1017 = vrot.lane.b32.xlu2 %v1276_v2, %s1237_s6 }
 0x4a9   :  { %598 = vadd.xlane.f32.xlu0 %v597_v46 }
 0x4bd   :  { %727 = vrot.lane.b32.xlu0 %v1265_v0, %s1236_s5 }
 0x4c5   :  { %741 = vrot.lane.b32.xlu0 %v1265_v0, %s1238_s7 }
 0x4cd   :  { %743 = vrot.lane.b32.xlu0 %v1276_v2, %s1238_s7 }
 0x4d5   :  { %1029 = vrot.lane.b32.xlu0 %v1265_v0, %s1239_s8 }
 0x4dd   :  { %871 = vrot.lane.b32.xlu0 %v1265_v0, %s1240_s9 }
 0x4e5   :  { %885 = vrot.lane.b32.xlu0 %v1265_v0, %s1241_s10 }
 0x4f1   :  { %v560_v52 = vpop.permute.xlu1 %559  ;;  %v539_v3 = vpop.permute.xlu0 %538 }
 0x4f2   :  { %1169 = vmatmul.msk.bf16.vlgmr.msrb.gmra.mxu2 %vm20_vm0, %v539_v3  ;;  %1170 = vmatmul.msk.bf16.vlgmr.msrb.gmra.mxu3 %vm20_vm0, %v560_v52 }
 0x4f3   :  { %1119 = vmatpush.bf16.msrb.mxu2 %v1368_v26  ;;  %1140 = vmatpush.bf16.msrb.mxu3 %v1419_v57  ;;  %v613_v57 = vpop.xlane.xlu2 %612 }
 0x4f9   :  { %v594_v4 = vpop.permute.xlu1 %593 }
 0x4fa   :  { %v600_v5 = vsel %vm20_vm0, %v594_v4, 0.0 }
 0x4fb   :  { %601 = vadd.xlane.f32.xlu1 %v600_v5  ;;  %v1018_v11 = vpop.permute.xlu2 %1017 }
 0x4fc   :  { %v1024_v13 = vsel %vm20_vm0, %v1018_v11, 0.0 }
 0x514   :  { %729 = vrot.lane.b32.xlu1 %v1276_v2, %s1236_s5 }
 0x51c   :  { %1015 = vrot.lane.b32.xlu1 %v1265_v0, %s1237_s6  ;;  %v599_v6 = vpop.xlane.xlu0 %598 }
 0x51d   :  { %v617_v39 = vadd.f32 %v613_v57, %v599_v6 }
 0x51f   :  { %v619_v40 = vmul.f32 0.0625, %v617_v39 }
 0x521   :  { %v1521_v42 = vsub.f32 %v1265_v0, %v619_v40 }
 0x523   :  { %v623_v44 = vmul.f32 %v1521_v42, %v1521_v42 }
 0x524   :  { %1031 = vrot.lane.b32.xlu1 %v1276_v2, %s1239_s8 }
 0x52c   :  { %873 = vrot.lane.b32.xlu1 %v1276_v2, %s1240_s9 }
 0x52f   :  { %v728_v26 = vpop.permute.xlu0 %727 }
 0x530   :  { %v733_v28 = vsel %vm20_vm0, %v728_v26, 0.0 }
 0x531   :  { %734 = vadd.xlane.f32.xlu2 %v733_v28 }
 0x534   :  { %887 = vrot.lane.b32.xlu1 %v1276_v2, %s1241_s10 }
 0x537   :  { %v742_v7 = vpop.permute.xlu0 %741 }
 0x538   :  { %v747_v8 = vsel %vm20_vm0, %v742_v7, 0.0  ;;  %v262_v7 = vpop.f32.mrf.mxu2 }
 0x53f   :  { %v744_v9 = vpop.permute.xlu0 %743 }
 0x540   :  { %v750_v10 = vsel %vm20_vm0, %v744_v9, 0.0 }
 0x541   :  { %751 = vadd.xlane.f32.xlu2 %v750_v10 }
 0x547   :  { %v1030_v12 = vpop.permute.xlu0 %1029 }
 0x548   :  { %v1035_v25 = vsel %vm20_vm0, %v1030_v12, 0.0  ;;  %v283_v12 = vpop.f32.mrf.mxu3 }
 0x54f   :  { %v872_v14 = vpop.permute.xlu0 %871 }
 0x550   :  { %v877_v15 = vsel %vm20_vm0, %v872_v14, 0.0 }
 0x557   :  { %v886_v27 = vpop.permute.xlu0 %885 }
 0x558   :  { %v891_v29 = vsel %vm20_vm0, %v886_v27, 0.0 }
 0x55e   :  { %748 = vadd.xlane.f32.xlu1 %v747_v8 }
 0x566   :  { %1025 = vadd.xlane.f32.xlu1 %v1024_v13 }
 0x56e   :  { %878 = vadd.xlane.f32.xlu1 %v877_v15  ;;  %v602_v16 = vpop.xlane.xlu1 %601 }
 0x586   :  { %v730_v17 = vpop.permute.xlu1 %729 }
 0x587   :  { %v736_v18 = vsel %vm20_vm0, %v730_v17, 0.0  ;;  %v428_v17 = vpop.f32.mrf.mxu1 }
 0x588   :  { %737 = vadd.xlane.f32.xlu0 %v736_v18  ;;  %v285_v18 = vpop.f32.mrf.mxu3 }
 0x58e   :  { %v1016_v19 = vpop.permute.xlu1 %1015 }
 0x58f   :  { %v1021_v22 = vsel %vm20_vm0, %v1016_v19, 0.0  ;;  %v430_v27 = vpop.f32.mrf.mxu1 }
 0x590   :  { %615 = vadd.xlane.f32.xlu0 %v614_v21  ;;  %1022 = vadd.xlane.f32.xlu2 %v1021_v22  ;;  %v267_v21 = vadd.f32 %v1443_v20, %v262_v7 }
 0x596   :  { %v1032_v23 = vpop.permute.xlu1 %1031 }
 0x597   :  { %v1038_v24 = vsel %vm20_vm0, %v1032_v23, 0.0 }
 0x598   :  { %1039 = vadd.xlane.f32.xlu2 %v1038_v24  ;;  %1036 = vadd.xlane.f32.xlu0 %v1035_v25 }
 0x59e   :  { %v874_v30 = vpop.permute.xlu1 %873 }
 0x59f   :  { %v880_v31 = vsel %vm20_vm0, %v874_v30, 0.0 }
 0x5a0   :  { %881 = vadd.xlane.f32.xlu0 %v880_v31  ;;  %892 = vadd.xlane.f32.xlu2 %v891_v29 }
 0x5a4   :  { %v735_v34 = vpop.xlane.xlu2 %734 }
 0x5a6   :  { %v888_v32 = vpop.permute.xlu1 %887 }
 0x5a7   :  { %v894_v33 = vsel %vm20_vm0, %v888_v32, 0.0 }
 0x5a8   :  { %895 = vadd.xlane.f32.xlu1 %v894_v33  ;;  %v573_v33 = vpop.f32.mrf.mxu3 }
 0x5b4   :  { %v752_v45 = vpop.xlane.xlu2 %751 }
 0x5d1   :  { %v749_v35 = vpop.xlane.xlu1 %748 }
 0x5d2   :  { %v753_v36 = vadd.f32 %v749_v35, %v735_v34 }
 0x5d4   :  { %v755_v37 = vmul.f32 0.0625, %v753_v36 }
 0x5d6   :  { %v1514_v38 = vsub.f32 %v1265_v0, %v755_v37  ;;  %v575_v37 = vpop.f32.mrf.mxu3 }
 0x5d8   :  { %v759_v41 = vmul.f32 %v1514_v38, %v1514_v38 }
 0x5d9   :  { %v1026_v59 = vpop.xlane.xlu1 %1025 }
 0x5da   :  { %777 = vrot.lane.b32.xlu1 %v759_v41, %s1238_s7  ;;  %763 = vrot.lane.b32.xlu0 %v759_v41, %s1236_s5 }
 0x5e1   :  { %v879_v26 = vpop.xlane.xlu1 %878 }
 0x5e2   :  { %641 = vrot.lane.b32.xlu1 %v623_v44, %s1235_s4 }
 0x5fb   :  { %v738_v47 = vpop.xlane.xlu0 %737 }
 0x5fc   :  { %v754_v48 = vadd.f32 %v752_v45, %v738_v47 }
 0x5fe   :  { %v756_v58 = vmul.f32 0.0625, %v754_v48 }
 0x600   :  { %v1527_v49 = vsub.f32 %v1276_v2, %v756_v58 }
 0x602   :  { %v760_v50 = vmul.f32 %v1527_v49, %v1527_v49 }
 0x603   :  { %v1023_v51 = vpop.xlane.xlu2 %1022  ;;  %v616_v53 = vpop.xlane.xlu0 %615 }
 0x604   :  { %v618_v54 = vadd.f32 %v616_v53, %v602_v16  ;;  %779 = vrot.lane.b32.xlu0 %v760_v50, %s1238_s7  ;;  %765 = vrot.lane.b32.xlu2 %v760_v50, %s1236_s5  ;;  %v264_v16 = vpop.f32.mrf.mxu2 }
 0x605   :  { %v268_v19 = vadd.f32 %v1443_v20, %v264_v16 }
 0x606   :  { %v620_v55 = vmul.f32 0.0625, %v618_v54 }
 0x607   :  { %v289_v22 = vadd.f32 %v285_v18, %v268_v19 }
 0x608   :  { %v1534_v56 = vsub.f32 %v1276_v2, %v620_v55 }
 0x60a   :  { %v624_v60 = vmul.f32 %v1534_v56, %v1534_v56 }
 0x60b   :  { %v1040_v61 = vpop.xlane.xlu2 %1039  ;;  %v1037_v62 = vpop.xlane.xlu0 %1036 }
 0x60c   :  { %v1042_v63 = vadd.f32 %v1040_v61, %v1026_v59  ;;  %v1041_v46 = vadd.f32 %v1037_v62, %v1023_v51  ;;  %627 = vrot.lane.b32.xlu2 %v623_v44, %s1234_s29  ;;  %629 = vrot.lane.b32.xlu0 %v624_v60, %s1234_s29  ;;  %v552_v30 = vpop.f32.mrf.mxu2 }
 0x60d   :  { %v557_v32 = vadd.f32 %v1443_v20, %v552_v30 }
 0x60e   :  { %v1044_v1 = vmul.f32 0.0625, %v1042_v63  ;;  %v1043_v52 = vmul.f32 0.0625, %v1041_v46 }
 0x60f   :  { %v578_v34 = vadd.f32 %v573_v33, %v557_v32 }
 0x610   :  { %v1541_v3 = vsub.f32 %v1276_v2, %v1044_v1  ;;  %v1544_v4 = vsub.f32 %v1265_v0, %v1043_v52 }
 0x612   :  { %v1048_v5 = vmul.f32 %v1541_v3, %v1541_v3  ;;  %v1047_v6 = vmul.f32 %v1544_v4, %v1544_v4 }
 0x613   :  { %v893_v28 = vpop.xlane.xlu2 %892  ;;  %v882_v9 = vpop.xlane.xlu0 %881 }
 0x614   :  { %v897_v43 = vadd.f32 %v893_v28, %v879_v26  ;;  %1053 = vrot.lane.b32.xlu1 %v1048_v5, %s1237_s6  ;;  %643 = vrot.lane.b32.xlu2 %v624_v60, %s1235_s4  ;;  %v554_v35 = vpop.f32.mrf.mxu2 }
 0x615   :  { %1051 = vrot.lane.b32.xlu0 %v1047_v6, %s1237_s6  ;;  %v558_v36 = vadd.f32 %v1443_v20, %v554_v35 }
 0x616   :  { %v899_v57 = vmul.f32 0.0625, %v897_v43 }
 0x617   :  { %v579_v40 = vadd.f32 %v575_v37, %v558_v36 }
 0x618   :  { %v1554_v39 = vsub.f32 %v1265_v0, %v899_v57  ;;  %v407_v0 = vpop.f32.mrf.mxu0 }
 0x619   :  { %v412_v25 = vadd.f32 %v1443_v20, %v407_v0 }
 0x61a   :  { %v903_v8 = vmul.f32 %v1554_v39, %v1554_v39 }
 0x61b   :  { %v896_v10 = vpop.xlane.xlu1 %895  ;;  %v433_v31 = vadd.f32 %v428_v17, %v412_v25 }
 0x61c   :  { %v898_v11 = vadd.f32 %v896_v10, %v882_v9  ;;  %907 = vrot.lane.b32.xlu1 %v903_v8, %s1240_s9  ;;  %1065 = vrot.lane.b32.xlu2 %v1047_v6, %s1239_s8 }
 0x61d   :  { %1067 = vrot.lane.b32.xlu0 %v1048_v5, %s1239_s8 }
 0x61e   :  { %v900_v13 = vmul.f32 0.0625, %v898_v11 }
 0x620   :  { %v1562_v14 = vsub.f32 %v1276_v2, %v900_v13  ;;  %v288_v2 = vadd.f32 %v283_v12, %v267_v21  ;;  %v409_v23 = vpop.f32.mrf.mxu0 }
 0x621   :  { %v413_v24 = vadd.f32 %v1443_v20, %v409_v23 }
 0x622   :  { %v904_v15 = vmul.f32 %v1562_v14, %v1562_v14 }
 0x623   :  { %v434_v29 = vadd.f32 %v430_v27, %v413_v24 }
 0x624   :  { %923 = vrot.lane.b32.xlu1 %v904_v15, %s1241_s10  ;;  %909 = vrot.lane.b32.xlu2 %v904_v15, %s1240_s9 }
 0x625   :  { %921 = vrot.lane.b32.xlu0 %v903_v8, %s1241_s10 }
 0x62c   :  { %294 = vrot.lane.b32.xlu2 %v289_v22, %s1235_s4 }
 0x62d   :  { %292 = vrot.lane.b32.xlu0 %v288_v2, %s1235_s4 }
 0x634   :  { %439 = vrot.lane.b32.xlu2 %v434_v29, %s1227_s14 }
 0x635   :  { %437 = vrot.lane.b32.xlu0 %v433_v31, %s1227_s14 }
 0x63d   :  { %582 = vrot.lane.b32.xlu0 %v578_v34, %s1234_s29 }
 0x645   :  { %584 = vrot.lane.b32.xlu0 %v579_v40, %s1234_s29 }
 0x64c   :  { %v778_v41 = vpop.permute.xlu1 %777  ;;  %v764_v45 = vpop.permute.xlu0 %763 }
 0x64d   :  { %v783_v44 = vsel %vm20_vm0, %v778_v41, 0.0  ;;  %v769_v47 = vsel %vm20_vm0, %v764_v45, 0.0 }
 0x64e   :  { %784 = vadd.xlane.f32.xlu1 %v783_v44 }
 0x654   :  { %v642_v60 = vpop.permute.xlu1 %641 }
 0x655   :  { %v647_v46 = vsel %vm20_vm0, %v642_v60, 0.0 }
 0x65d   :  { %770 = vadd.xlane.f32.xlu2 %v769_v47 }
 0x65e   :  { %v766_v48 = vpop.permute.xlu2 %765 }
 0x65f   :  { %v772_v51 = vsel %vm20_vm0, %v766_v48, 0.0 }
 0x666   :  { %v628_v58 = vpop.permute.xlu2 %627 }
 0x667   :  { %v633_v54 = vsel %vm20_vm0, %v628_v58, 0.0 }
 0x66e   :  { %v644_v50 = vpop.permute.xlu2 %643 }
 0x66f   :  { %773 = vadd.xlane.f32.xlu0 %v772_v51  ;;  %v650_v61 = vsel %vm20_vm0, %v644_v50, 0.0 }
 0x676   :  { %v1066_v53 = vpop.permute.xlu2 %1065  ;;  %v780_v55 = vpop.permute.xlu0 %779 }
 0x677   :  { %634 = vadd.xlane.f32.xlu0 %v633_v54  ;;  %v786_v59 = vsel %vm20_vm0, %v780_v55, 0.0  ;;  %v1071_v5 = vsel %vm20_vm0, %v1066_v53, 0.0 }
 0x678   :  { %787 = vadd.xlane.f32.xlu2 %v786_v59 }
 0x67e   :  { %v910_v62 = vpop.permute.xlu2 %909  ;;  %v630_v63 = vpop.permute.xlu0 %629 }
 0x67f   :  { %651 = vadd.xlane.f32.xlu0 %v650_v61  ;;  %v636_v1 = vsel %vm20_vm0, %v630_v63, 0.0  ;;  %v916_v7 = vsel %vm20_vm0, %v910_v62, 0.0 }
 0x680   :  { %648 = vadd.xlane.f32.xlu2 %v647_v46  ;;  %637 = vadd.xlane.f32.xlu1 %v636_v1 }
 0x686   :  { %v1054_v52 = vpop.permute.xlu1 %1053  ;;  %v295_v6 = vpop.permute.xlu2 %294 }
 0x687   :  { %1072 = vadd.xlane.f32.xlu0 %v1071_v5  ;;  %300 = vst.msk [vmem:[%s1705_s3 + $0x10] sm:$0xff] %vm298_vm12, %v295_v6  ;;  %v1052_v26 = vpop.permute.xlu0 %1051  ;;  %v1060_v28 = vsel %vm20_vm0, %v1054_v52, 0.0 }
 0x688   :  { %1061 = vadd.xlane.f32.xlu2 %v1060_v28  ;;  %v1057_v43 = vsel %vm20_vm0, %v1052_v26, 0.0 }
 0x689   :  { %1058 = vadd.xlane.f32.xlu1 %v1057_v43 }
 0x68e   :  { %v908_v57 = vpop.permute.xlu1 %907  ;;  %v440_v8 = vpop.permute.xlu2 %439 }
 0x68f   :  { %917 = vadd.xlane.f32.xlu0 %v916_v7  ;;  %445 = vst.msk [vmem:[%s1705_s3 + $0x10] sm:$0xff] %vm443_vm13, %v440_v8  ;;  %v1068_v9 = vpop.permute.xlu0 %1067  ;;  %v913_v10 = vsel %vm20_vm0, %v908_v57, 0.0 }
 0x690   :  { %914 = vadd.xlane.f32.xlu2 %v913_v10  ;;  %v1074_v11 = vsel %vm20_vm0, %v1068_v9, 0.0 }
 0x691   :  { %1075 = vadd.xlane.f32.xlu1 %v1074_v11 }
 0x696   :  { %v924_v12 = vpop.permute.xlu1 %923 }
 0x697   :  { %v922_v13 = vpop.permute.xlu0 %921  ;;  %v930_v0 = vsel %vm20_vm0, %v924_v12, 0.0 }
 0x698   :  { %931 = vadd.xlane.f32.xlu2 %v930_v0  ;;  %v927_v15 = vsel %vm20_vm0, %v922_v13, 0.0 }
 0x699   :  { %928 = vadd.xlane.f32.xlu1 %v927_v15 }
 0x69f   :  { %v293_v16 = vpop.permute.xlu0 %292 }
 0x6a0   :  { %299 = vst.msk [vmem:[%s1705_s3] sm:$0xff] %vm298_vm12, %v293_v16 }
 0x6a7   :  { %v438_v17 = vpop.permute.xlu0 %437 }
 0x6a8   :  { %444 = vst.msk [vmem:[%s1705_s3] sm:$0xff] %vm443_vm13, %v438_v17 }
 0x6af   :  { %v583_v18 = vpop.permute.xlu0 %582 }
 0x6b0   :  { %589 = vst.msk [vmem:[%s1705_s3] sm:$0xff] %vm588_vm14, %v583_v18 }
 0x6b7   :  { %v585_v19 = vpop.permute.xlu0 %584 }
 0x6b8   :  { %590 = vst.msk [vmem:[%s1705_s3 + $0x10] sm:$0xff] %vm588_vm14, %v585_v19 }
 0x6c1   :  { %v785_v21 = vpop.xlane.xlu1 %784 }
 0x6d0   :  { %v771_v22 = vpop.xlane.xlu2 %770 }
 0x6d1   :  { %v789_v2 = vadd.f32 %v785_v21, %v771_v22 }
 0x6d3   :  { %v791_v23 = vmul.f32 0.0625, %v789_v2 }
 0x6d5   :  { %v793_v24 = vadd.f32 1e-05, %v791_v23 }
 0x6d7   :  { %1211 = vrsqrt.f32 %v793_v24  ;;  %vm801_vm15 = vweird.f32 %v793_v24 }
 0x6dd   :  { %v1212_v27 = vpop.eup %1211 }
 0x6de   :  { %v796_v31 = vmul.f32 %v1212_v27, %v793_v24  ;;  %vm802_vm2 = vweird.f32 %v1212_v27 }
 0x6df   :  { %vm1621_vm3 = vmor %vm801_vm15, %vm802_vm2 }
 0x6e0   :  { %v797_v34 = vmul.f32 %v1212_v27, %v796_v31 }
 0x6e2   :  { %v774_v25 = vpop.xlane.xlu0 %773  ;;  %v798_v41 = vmul.f32 0.5, %v797_v34 }
 0x6e4   :  { %v799_v50 = vsub.f32 1.5, %v798_v41 }
 0x6e6   :  { %v800_v60 = vmul.f32 %v1212_v27, %v799_v50 }
 0x6e8   :  { %v804_v26 = vsel %vm1621_vm3, %v1212_v27, %v800_v60 }
 0x6e9   :  { %v815_v0 = vmul.f32 %v804_v26, %v1514_v38 }
 0x6ea   :  { %v635_v29 = vpop.xlane.xlu0 %634 }
 0x6eb   :  { %v788_v30 = vpop.xlane.xlu2 %787 }
 0x6ec   :  { %v790_v32 = vadd.f32 %v788_v30, %v774_v25 }
 0x6ee   :  { %v792_v33 = vmul.f32 0.0625, %v790_v32 }
 0x6f0   :  { %v794_v35 = vadd.f32 1e-05, %v792_v33 }
 0x6f2   :  { %1213 = vrsqrt.f32 %v794_v35  ;;  %v652_v36 = vpop.xlane.xlu0 %651  ;;  %vm811_vm5 = vweird.f32 %v794_v35 }
 0x6f3   :  { %v649_v37 = vpop.xlane.xlu2 %648  ;;  %v638_v40 = vpop.xlane.xlu1 %637 }
 0x6f4   :  { %v653_v44 = vadd.f32 %v649_v37, %v635_v29  ;;  %v654_v45 = vadd.f32 %v652_v36, %v638_v40 }
 0x6f6   :  { %v655_v47 = vmul.f32 0.0625, %v653_v44  ;;  %v656_v48 = vmul.f32 0.0625, %v654_v45 }
 0x6f8   :  { %v1214_v58 = vpop.eup %1213  ;;  %v657_v51 = vadd.f32 1e-05, %v655_v47  ;;  %v658_v53 = vadd.f32 1e-05, %v656_v48 }
 0x6f9   :  { %v806_v54 = vmul.f32 %v1214_v58, %v794_v35  ;;  %vm812_vm4 = vweird.f32 %v1214_v58 }
 0x6fa   :  { %1215 = vrsqrt.f32 %v657_v51  ;;  %v1073_v61 = vpop.xlane.xlu0 %1072  ;;  %vm813_vm6 = vmor %vm811_vm5, %vm812_vm4  ;;  %vm665_vm9 = vweird.f32 %v657_v51  ;;  %vm675_vm11 = vweird.f32 %v658_v53 }
 0x6fb   :  { %v807_v55 = vmul.f32 %v1214_v58, %v806_v54  ;;  %1217 = vrsqrt.f32 %v658_v53  ;;  %v1062_v59 = vpop.xlane.xlu2 %1061 }
 0x6fc   :  { %v1059_v62 = vpop.xlane.xlu1 %1058 }
 0x6fd   :  { %v808_v63 = vmul.f32 0.5, %v807_v55  ;;  %v1077_v46 = vadd.f32 %v1073_v61, %v1059_v62 }
 0x6ff   :  { %v809_v52 = vsub.f32 1.5, %v808_v63  ;;  %v1079_v5 = vmul.f32 0.0625, %v1077_v46 }
 0x700   :  { %v1216_v6 = vpop.eup %1215 }
 0x701   :  { %v1218_v28 = vpop.eup %1217  ;;  %v810_v43 = vmul.f32 %v1214_v58, %v809_v52  ;;  %v660_v57 = vmul.f32 %v1216_v6, %v657_v51  ;;  %v1627_v7 = vadd.f32 1e-05, %v1079_v5  ;;  %vm666_vm7 = vweird.f32 %v1216_v6 }
 0x702   :  { %v670_v8 = vmul.f32 %v1218_v28, %v658_v53  ;;  %vm676_vm8 = vweird.f32 %v1218_v28  ;;  %vm667_vm10 = vmor %vm665_vm9, %vm666_vm7  ;;  %v918_v29 = vpop.xlane.xlu0 %917 }
 0x703   :  { %v661_v9 = vmul.f32 %v1216_v6, %v660_v57  ;;  %1219 = vrsqrt.f32 %v1627_v7  ;;  %v915_v10 = vpop.xlane.xlu2 %914  ;;  %v814_v11 = vsel %vm813_vm6, %v1214_v58, %v810_v43  ;;  %vm677_vm15 = vmor %vm675_vm11, %vm676_vm8  ;;  %vm1089_vm3 = vweird.f32 %v1627_v7 }
 0x704   :  { %v671_v12 = vmul.f32 %v1218_v28, %v670_v8  ;;  %v1076_v13 = vpop.xlane.xlu1 %1075  ;;  %v816_v15 = vmul.f32 %v814_v11, %v1527_v49 }
 0x705   :  { %v662_v16 = vmul.f32 0.5, %v661_v9  ;;  %v1078_v17 = vadd.f32 %v1076_v13, %v1062_v59 }
 0x706   :  { %v672_v18 = vmul.f32 0.5, %v671_v12  ;;  %v817_v19 = vpack.c.bf16 %v816_v15, %v815_v0 }
 0x707   :  { %v663_v21 = vsub.f32 1.5, %v662_v16  ;;  %v1080_v22 = vmul.f32 0.0625, %v1078_v17 }
 0x708   :  { %v673_v2 = vsub.f32 1.5, %v672_v18  ;;  %840 = vrot.lane.b32.xlu1 %v817_v19, %s1238_s7  ;;  %819 = vrot.lane.b32.xlu0 %v817_v19, %s1236_s5 }
 0x709   :  { %v1220_v23 = vpop.eup %1219  ;;  %v664_v24 = vmul.f32 %v1216_v6, %v663_v21  ;;  %v1082_v25 = vadd.f32 1e-05, %v1080_v22 }
 0x70a   :  { %v674_v38 = vmul.f32 %v1218_v28, %v673_v2  ;;  %v1084_v49 = vmul.f32 %v1220_v23, %v1627_v7  ;;  %vm1090_vm2 = vweird.f32 %v1220_v23 }
 0x70b   :  { %v668_v27 = vsel %vm667_vm10, %v1216_v6, %v664_v24  ;;  %1221 = vrsqrt.f32 %v1082_v25  ;;  %v932_v30 = vpop.xlane.xlu2 %931  ;;  %vm1091_vm5 = vmor %vm1089_vm3, %vm1090_vm2  ;;  %vm1099_vm6 = vweird.f32 %v1082_v25 }
 0x70c   :  { %v678_v31 = vsel %vm677_vm15, %v1218_v28, %v674_v38  ;;  %v1085_v32 = vmul.f32 %v1220_v23, %v1084_v49  ;;  %v934_v33 = vadd.f32 %v932_v30, %v918_v29  ;;  %v929_v34 = vpop.xlane.xlu1 %928  ;;  %v679_v35 = vmul.f32 %v668_v27, %v1521_v42 }
 0x70d   :  { %v933_v36 = vadd.f32 %v929_v34, %v915_v10  ;;  %v680_v37 = vmul.f32 %v678_v31, %v1534_v56 }
 0x70e   :  { %v1086_v40 = vmul.f32 0.5, %v1085_v32  ;;  %v936_v41 = vmul.f32 0.0625, %v934_v33 }
 0x70f   :  { %v935_v44 = vmul.f32 0.0625, %v933_v36  ;;  %v681_v45 = vpack.c.bf16 %v680_v37, %v679_v35 }
 0x710   :  { %v938_v47 = vadd.f32 1e-05, %v936_v41  ;;  %v1087_v50 = vsub.f32 1.5, %v1086_v40 }
 0x711   :  { %v1222_v48 = vpop.eup %1221  ;;  %v937_v58 = vadd.f32 1e-05, %v935_v44  ;;  %704 = vrot.lane.b32.xlu0 %v681_v45, %s1235_s4  ;;  %683 = vrot.lane.b32.xlu2 %v681_v45, %s1234_s29 }
 0x712   :  { %v1094_v51 = vmul.f32 %v1222_v48, %v1082_v25  ;;  %1223 = vrsqrt.f32 %v938_v47  ;;  %v1088_v42 = vmul.f32 %v1220_v23, %v1087_v50  ;;  %vm1100_vm4 = vweird.f32 %v1222_v48 }
 0x713   :  { %1225 = vrsqrt.f32 %v937_v58  ;;  %vm1101_vm7 = vmor %vm1099_vm6, %vm1100_vm4  ;;  %vm955_vm10 = vweird.f32 %v938_v47  ;;  %vm945_vm15 = vweird.f32 %v937_v58 }
 0x714   :  { %v1095_v53 = vmul.f32 %v1222_v48, %v1094_v51  ;;  %v1092_v61 = vsel %vm1091_vm5, %v1220_v23, %v1088_v42 }
 0x715   :  { %v1103_v6 = vmul.f32 %v1092_v61, %v1544_v4 }
 0x716   :  { %v1096_v54 = vmul.f32 0.5, %v1095_v53 }
 0x718   :  { %v1224_v56 = vpop.eup %1223  ;;  %v1097_v55 = vsub.f32 1.5, %v1096_v54 }
 0x719   :  { %v1226_v59 = vpop.eup %1225  ;;  %v950_v60 = vmul.f32 %v1224_v56, %v938_v47  ;;  %vm956_vm8 = vweird.f32 %v1224_v56 }
 0x71a   :  { %v1098_v62 = vmul.f32 %v1222_v48, %v1097_v55  ;;  %v940_v63 = vmul.f32 %v1226_v59, %v937_v58  ;;  %vm946_vm9 = vweird.f32 %v1226_v59  ;;  %vm957_vm11 = vmor %vm955_vm10, %vm956_vm8 }
 0x71b   :  { %v951_v46 = vmul.f32 %v1224_v56, %v950_v60  ;;  %vm947_vm2 = vmor %vm945_vm15, %vm946_vm9 }
 0x71c   :  { %v1102_v1 = vsel %vm1101_vm7, %v1222_v48, %v1098_v62  ;;  %v941_v52 = vmul.f32 %v1226_v59, %v940_v63 }
 0x71d   :  { %v952_v5 = vmul.f32 0.5, %v951_v46  ;;  %v1104_v26 = vmul.f32 %v1102_v1, %v1541_v3 }
 0x71e   :  { %v942_v28 = vmul.f32 0.5, %v941_v52 }
 0x71f   :  { %v953_v43 = vsub.f32 1.5, %v952_v5  ;;  %v1105_v57 = vpack.c.bf16 %v1104_v26, %v1103_v6 }
 0x720   :  { %v943_v7 = vsub.f32 1.5, %v942_v28 }
 0x721   :  { %v954_v8 = vmul.f32 %v1224_v56, %v953_v43  ;;  %1128 = vrot.lane.b32.xlu0 %v1105_v57, %s1239_s8  ;;  %1107 = vrot.lane.b32.xlu1 %v1105_v57, %s1237_s6 }
 0x722   :  { %v944_v9 = vmul.f32 %v1226_v59, %v943_v7 }
 0x723   :  { %v958_v10 = vsel %vm957_vm11, %v1224_v56, %v954_v8 }
 0x724   :  { %v948_v4 = vsel %vm947_vm2, %v1226_v59, %v944_v9  ;;  %v960_v3 = vmul.f32 %v958_v10, %v1562_v14 }
 0x725   :  { %v959_v11 = vmul.f32 %v948_v4, %v1554_v39 }
 0x727   :  { %v961_v12 = vpack.c.bf16 %v960_v3, %v959_v11 }
 0x729   :  { %984 = vrot.lane.b32.xlu1 %v961_v12, %s1241_s10  ;;  %963 = vrot.lane.b32.xlu2 %v961_v12, %s1240_s9 }
 0x76b   :  { %v684_v13 = vpop.permute.xlu2 %683 }
 0x76c   :  { %1171 = vmatmul.msk.bf16.vlgmr.msra.gmra.mxu0 %vm20_vm0, %v684_v13 }
 0x77a   :  { %v841_v0 = vpop.permute.xlu1 %840  ;;  %v820_v15 = vpop.permute.xlu0 %819 }
 0x77b   :  { %1173 = vmatmul.msk.bf16.vlgmr.msra.gmra.mxu2 %vm20_vm0, %v820_v15  ;;  %1174 = vmatmul.msk.bf16.vlgmr.msra.gmra.mxu3 %vm20_vm0, %v841_v0 }
 0x783   :  { %v964_v16 = vpop.permute.xlu2 %963  ;;  %v705_v17 = vpop.permute.xlu0 %704 }
 0x784   :  { %1172 = vmatmul.msk.bf16.vlgmr.msra.gmra.mxu1 %vm20_vm0, %v705_v17  ;;  %1175 = vmatmul.msk.bf16.vlgmr.msrb.gmra.mxu0 %vm20_vm0, %v964_v16 }
 0x793   :  { %v1108_v39 = vpop.permute.xlu1 %1107  ;;  %v1129_v14 = vpop.permute.xlu0 %1128 }
 0x794   :  { %1177 = vmatmul.msk.bf16.vlgmr.msrb.gmra.mxu2 %vm20_vm0, %v1108_v39  ;;  %1178 = vmatmul.msk.bf16.vlgmr.msrb.gmra.mxu3 %vm20_vm0, %v1129_v14 }
 0x79b   :  { %v985_v18 = vpop.permute.xlu1 %984 }
 0x79c   :  { %1176 = vmatmul.msk.bf16.vlgmr.msrb.gmra.mxu1 %vm20_vm0, %v985_v18 }
 0x7e9   :  { %v697_v19 = vpop.f32.mrf.mxu0 }
 0x7ea   :  { %v702_v23 = vadd.f32 %v1443_v20, %v697_v19 }
 0x7f1   :  { %v699_v49 = vpop.f32.mrf.mxu0 }
 0x7f2   :  { %v703_v30 = vadd.f32 %v1443_v20, %v699_v49 }
 0x7fe   :  { %v833_v21 = vpop.f32.mrf.mxu2  ;;  %v854_v22 = vpop.f32.mrf.mxu3 }
 0x7ff   :  { %v838_v2 = vadd.f32 %v1443_v20, %v833_v21 }
 0x801   :  { %v859_v24 = vadd.f32 %v854_v22, %v838_v2  ;;  %v718_v25 = vpop.f32.mrf.mxu1  ;;  %v977_v35 = vpop.f32.mrf.mxu0 }
 0x802   :  { %v723_v38 = vadd.f32 %v718_v25, %v702_v23  ;;  %v982_v40 = vadd.f32 %v1443_v20, %v977_v35 }
 0x803   :  { %863 = vrot.lane.b32.xlu0 %v859_v24, %s1235_s4 }
 0x804   :  { %725 = vst.msk [vmem:[%s1705_s3 + $0x8] sm:$0xff] %vm153_vm1, %v723_v38 }
 0x806   :  { %v835_v27 = vpop.f32.mrf.mxu2  ;;  %v856_v31 = vpop.f32.mrf.mxu3 }
 0x807   :  { %v839_v29 = vadd.f32 %v1443_v20, %v835_v27 }
 0x809   :  { %v860_v32 = vadd.f32 %v856_v31, %v839_v29  ;;  %v720_v33 = vpop.f32.mrf.mxu1  ;;  %v979_v48 = vpop.f32.mrf.mxu0 }
 0x80a   :  { %v724_v34 = vadd.f32 %v720_v33, %v703_v30  ;;  %v983_v50 = vadd.f32 %v1443_v20, %v979_v48 }
 0x80b   :  { %865 = vrot.lane.b32.xlu2 %v860_v32, %s1235_s4 }
 0x80c   :  { %726 = vst.msk [vmem:[%s1705_s3 + $0x18] sm:$0xff] %vm153_vm1, %v724_v34 }
 0x817   :  { %v1121_v36 = vpop.f32.mrf.mxu2  ;;  %v1142_v37 = vpop.f32.mrf.mxu3 }
 0x818   :  { %v1126_v41 = vadd.f32 %v1443_v20, %v1121_v36 }
 0x819   :  { %v998_v44 = vpop.f32.mrf.mxu1 }
 0x81a   :  { %v1147_v45 = vadd.f32 %v1142_v37, %v1126_v41  ;;  %v1003_v47 = vadd.f32 %v998_v44, %v982_v40 }
 0x81c   :  { %1007 = vrot.lane.b32.xlu1 %v1003_v47, %s1227_s14  ;;  %1151 = vrot.lane.b32.xlu2 %v1147_v45, %s1234_s29 }
 0x81f   :  { %v1123_v58 = vpop.f32.mrf.mxu2  ;;  %v1144_v53 = vpop.f32.mrf.mxu3 }
 0x820   :  { %v1127_v51 = vadd.f32 %v1443_v20, %v1123_v58 }
 0x821   :  { %v1000_v42 = vpop.f32.mrf.mxu1 }
 0x822   :  { %v1148_v54 = vadd.f32 %v1144_v53, %v1127_v51  ;;  %v1004_v56 = vadd.f32 %v1000_v42, %v983_v50 }
 0x824   :  { %1009 = vrot.lane.b32.xlu0 %v1004_v56, %s1227_s14  ;;  %1153 = vrot.lane.b32.xlu1 %v1148_v54, %s1234_s29 }
 0x865   :  { %v866_v55 = vpop.permute.xlu2 %865 }
 0x866   :  { %870 = vst.msk [vmem:[%s1705_s3 + $0x18] sm:$0xff] %vm298_vm12, %v866_v55 }
 0x875   :  { %v864_v59 = vpop.permute.xlu0 %863 }
 0x876   :  { %869 = vst.msk [vmem:[%s1705_s3 + $0x8] sm:$0xff] %vm298_vm12, %v864_v59  ;;  %v1152_v60 = vpop.permute.xlu2 %1151 }
 0x88e   :  { %v1008_v20 = vpop.permute.xlu1 %1007 }
 0x88f   :  { %1013 = vst.msk [vmem:[%s1705_s3 + $0x8] sm:$0xff] %vm443_vm13, %v1008_v20 }
 0x890   :  { %1157 = vst.msk [vmem:[%s1705_s3 + $0x8] sm:$0xff] %vm588_vm14, %v1152_v60 }
 0x896   :  { %v1154_v61 = vpop.permute.xlu1 %1153  ;;  %v1010_v62 = vpop.permute.xlu0 %1009 }
 0x897   :  { %1014 = vst.msk [vmem:[%s1705_s3 + $0x18] sm:$0xff] %vm443_vm13, %v1010_v62 }
 0x898   :  { %1158 = vst.msk [vmem:[%s1705_s3 + $0x18] sm:$0xff] %vm588_vm14, %v1154_v61 }

</bundles_post_ra>
